<compile_context>
chip_gen: v6e
topology: v6e:2x2x1
jax: 0.10.0
libtpu: 0.0.40
codegen_flags: <defaults>
</compile_context>

<pallas_src>
import functools

import jax
import jax.numpy as jnp
from jax import lax
from jax.experimental import pallas as pl
from jax.experimental.pallas import tpu as pltpu


# ------------------------------ fused kernel --------------------------------

def _ssh_fused_kernel(xb_ref, mask_ref,
                      w31_ref, s31_ref, b31_ref,     # conv3x3 branch: 1x1+BN+ReLU
                      w32_ref, s32_ref, b32_ref,     # conv3x3 branch: 3x3+BN
                      w51_ref, s51_ref, b51_ref,     # conv5x5_1: 1x1+BN+ReLU
                      w5a_ref, s5a_ref, b5a_ref,     # conv5x5_1: 3x3+BN
                      w5b_ref, s5b_ref, b5b_ref,     # conv5x5_2: 3x3+BN
                      w7b_ref, s7b_ref, b7b_ref,     # conv7x7_2: 3x3+BN+ReLU
                      w7c_ref, s7c_ref, b7c_ref,     # conv7x7_3: 3x3+BN
                      o_ref, *, H, W):
    """One batch image per grid step, everything VMEM-resident.

    Layout: channel-major, spatial flattened on the lane axis.  A 'buffer' is
    (C, L) with L = (H+2)*(W+2) + 2*((W+2)+1); the zero-padded image occupies
    columns [pad, pad+Np) (row-major over the padded grid), everything else is
    zero.  With that layout the tap (dy,dx) of a 3x3/pad=1 conv reads columns
    [dy*Wp+dx : dy*Wp+dx+Np], i.e. a contiguous lane slice.
    """
    Hp, Wp = H + 2, W + 2
    Np = Hp * Wp
    pad = Wp + 1
    shifts = tuple(dy * Wp + dx for dy in range(3) for dx in range(3))

    xb = xb_ref[0]                         # (Cin, L)  bf16
    mask_l = mask_ref[...]                 # (1, L)    f32  (1 at interior data cols)
    mask_np = mask_l[:, pad:pad + Np]      # (1, Np)

    def conv1x1_bn_relu(w_ref, s_ref, b_ref):
        # (Cout, Cin)bf16 @ (Cin, L)bf16 -> f32
        y = jnp.dot(w_ref[...], xb, preferred_element_type=jnp.float32)
        y = jnp.maximum(y * s_ref[...] + b_ref[...], 0.0)
        return y * mask_l                  # (Cout, L) f32 padded-grid buffer

    def conv3x3_bn(buf, w_ref, s_ref, b_ref, *, relu, rebuffer):
        # im2col: 9 contiguous lane slices -> (9*Cin, Np), single MXU matmul.
        patches = jnp.concatenate(
            [buf[:, sh:sh + Np] for sh in shifts], axis=0).astype(jnp.bfloat16)
        y = jnp.dot(w_ref[...], patches, preferred_element_type=jnp.float32)
        y = y * s_ref[...] + b_ref[...]    # BN in f32
        if relu:
            y = jnp.maximum(y, 0.0)
        if not rebuffer:
            return y                       # (Cout, Np) f32 (border cols unused)
        # zero the (garbage) border positions and re-pad to a full L-buffer so
        # it can feed the next 3x3 conv directly.
        y = y * mask_np
        z = jnp.zeros((y.shape[0], pad), jnp.float32)
        return jnp.concatenate([z, y, z], axis=1)   # (Cout, L)

    # ---- branch: conv3x3 ----
    t3 = conv1x1_bn_relu(w31_ref, s31_ref, b31_ref)
    br3 = conv3x3_bn(t3, w32_ref, s32_ref, b32_ref, relu=True, rebuffer=False)

    # ---- branch: conv5x5 / conv7x7 (shared conv5x5_1) ----
    t5 = conv1x1_bn_relu(w51_ref, s51_ref, b51_ref)
    c551 = conv3x3_bn(t5, w5a_ref, s5a_ref, b5a_ref, relu=False, rebuffer=True)
    br5 = conv3x3_bn(c551, w5b_ref, s5b_ref, b5b_ref, relu=True, rebuffer=False)
    c772 = conv3x3_bn(c551, w7b_ref, s7b_ref, b7b_ref, relu=True, rebuffer=True)
    br7 = conv3x3_bn(c772, w7c_ref, s7c_ref, b7c_ref, relu=True, rebuffer=False)

    # final relu(cat(...)) is already folded into br3/br5/br7 above.
    out = jnp.concatenate([br3, br5, br7], axis=0)   # (C_out, Np) f32
    o_ref[0] = out.astype(o_ref.dtype)


# ------------------------------- glue / params ------------------------------

def fold_bn(gamma, beta, mean, var, eps=1e-5):
    scale = gamma / jnp.sqrt(var + eps)
    bias = beta - mean * scale
    return scale.reshape(-1, 1).astype(jnp.float32), \
           bias.reshape(-1, 1).astype(jnp.float32)


def grouped3x3_to_matmul(w_g, groups):
    """Torch grouped OIHW [Cout, Cin/g, 3, 3] -> channel-major matmul weight
    [Cout, 9*Cin] (block-diagonal over groups, layout [cout, tap*Cin + cin])."""
    Cout, Cin_g, kh, kw = w_g.shape
    Cin = Cin_g * groups
    Cout_g = Cout // groups
    dense = jnp.zeros((Cout, Cin, kh, kw), w_g.dtype)
    for g in range(groups):
        dense = dense.at[g * Cout_g:(g + 1) * Cout_g,
                         g * Cin_g:(g + 1) * Cin_g].set(
                             w_g[g * Cout_g:(g + 1) * Cout_g])
    # [Cout, Cin, kh, kw] -> [Cout, kh, kw, Cin] -> [Cout, 9*Cin]
    return dense.transpose(0, 2, 3, 1).reshape(Cout, kh * kw * Cin)


def init_params(key, in_channel, out_channel, groups=4, reduction=2):
    assert out_channel % 4 == 0
    mid = max(out_channel // reduction, 16)
    oc2, oc4 = out_channel // 2, out_channel // 4
    g3 = min(groups, mid)
    g4 = min(groups, oc4)
    keys = iter(jax.random.split(key, 64))

    def conv_w(cout, cin_g, k):
        return 0.1 * jax.random.normal(next(keys), (cout, cin_g, k, k),
                                       jnp.float32)

    def bn(c):
        gamma = 1.0 + 0.1 * jax.random.uniform(next(keys), (c,), jnp.float32)
        beta = 0.05 * jax.random.normal(next(keys), (c,), jnp.float32)
        mean = 0.02 * jax.random.normal(next(keys), (c,), jnp.float32)
        var = 1.0 + 0.1 * jax.random.uniform(next(keys), (c,), jnp.float32)
        return gamma, beta, mean, var

    p = {
        "c3_1x1_w": conv_w(mid, in_channel, 1), "c3_bn1": bn(mid),
        "c3_3x3_w": conv_w(oc2, mid // g3, 3), "c3_bn2": bn(oc2),
        "c5_1x1_w": conv_w(oc4, in_channel, 1), "c5_bn1": bn(oc4),
        "c5_3x3_w": conv_w(oc4, oc4 // g4, 3), "c5_bn2": bn(oc4),
        "c52_w": conv_w(oc4, oc4 // g4, 3), "c52_bn": bn(oc4),
        "c72_w": conv_w(oc4, oc4 // g4, 3), "c72_bn": bn(oc4),
        "c73_w": conv_w(oc4, oc4 // g4, 3), "c73_bn": bn(oc4),
        "_meta": (in_channel, out_channel, mid, g3, g4),
    }
    return p


def ssh_grouped_forward(x_nchw, p):
    """Fused Pallas implementation of SSH_Grouped.forward.  NCHW in / NCHW out."""
    _, out_ch, _, g3, g4 = p["_meta"]
    N, Cin, H, W = x_nchw.shape
    Hp, Wp = H + 2, W + 2
    Np = Hp * Wp
    pad = Wp + 1
    L = Np + 2 * pad
    C_out = out_ch
    bf = jnp.bfloat16

    # Input in padded-grid channel-major layout: (N, Cin, L), bf16.
    xp = jnp.pad(x_nchw.astype(jnp.float32), ((0, 0), (0, 0), (1, 1), (1, 1)))
    xb = jnp.pad(xp.reshape(N, Cin, Np), ((0, 0), (0, 0), (pad, pad))).astype(bf)

    # Interior-position mask over the L flattened columns.
    m2 = jnp.zeros((Hp, Wp), jnp.float32).at[1:H + 1, 1:W + 1].set(1.0)
    mask = jnp.pad(m2.reshape(-1), (pad, pad)).reshape(1, L)

    def prep_1x1(wkey, bnkey):
        s, b = fold_bn(*p[bnkey])
        return [p[wkey][:, :, 0, 0].astype(bf), s, b]

    def prep_3x3(wkey, bnkey, groups):
        s, b = fold_bn(*p[bnkey])
        return [grouped3x3_to_matmul(p[wkey], groups).astype(bf), s, b]

    args = []
    args += prep_1x1("c3_1x1_w", "c3_bn1")
    args += prep_3x3("c3_3x3_w", "c3_bn2", g3)
    args += prep_1x1("c5_1x1_w", "c5_bn1")
    args += prep_3x3("c5_3x3_w", "c5_bn2", g4)
    args += prep_3x3("c52_w", "c52_bn", g4)
    args += prep_3x3("c72_w", "c72_bn", g4)
    args += prep_3x3("c73_w", "c73_bn", g4)

    in_specs = ([pl.BlockSpec((1, Cin, L), lambda n: (n, 0, 0)),
                 pl.BlockSpec((1, L), lambda n: (0, 0))] +
                [pl.BlockSpec(a.shape, lambda n: (0, 0)) for a in args])

    out = pl.pallas_call(
        functools.partial(_ssh_fused_kernel, H=H, W=W),
        out_shape=jax.ShapeDtypeStruct((N, C_out, Np), jnp.float32),
        grid=(N,),
        in_specs=in_specs,
        out_specs=pl.BlockSpec((1, C_out, Np), lambda n: (n, 0, 0)),
        compiler_params=pltpu.CompilerParams(
            dimension_semantics=("parallel",)),
    )(xb, mask, *args)

    # Drop the padded-grid border and return NCHW directly (no transpose).
    return out.reshape(N, C_out, Hp, Wp)[:, :, 1:H + 1, 1:W + 1]


# ----------------------------- pure-JAX reference ---------------------------

def _conv_ref(x_nhwc, w_oihw, groups, padding):
    w = jnp.transpose(w_oihw, (2, 3, 1, 0))            # OIHW -> HWIO
    return lax.conv_general_dilated(
        x_nhwc, w, window_strides=(1, 1), padding=padding,
        dimension_numbers=("NHWC", "HWIO", "NHWC"),
        feature_group_count=groups)


def _bn_ref(x, bnp, eps=1e-5):
    gamma, beta, mean, var = bnp
    return (x - mean) / jnp.sqrt(var + eps) * gamma + beta


def ssh_grouped_reference(x_nchw, p):
    _, _, _, g3, g4 = p["_meta"]
    x = jnp.transpose(x_nchw, (0, 2, 3, 1)).astype(jnp.float32)

    t = jax.nn.relu(_bn_ref(_conv_ref(x, p["c3_1x1_w"], 1, "VALID"),
                            p["c3_bn1"]))
    conv3x3 = _bn_ref(_conv_ref(t, p["c3_3x3_w"], g3, "SAME"), p["c3_bn2"])

    t = jax.nn.relu(_bn_ref(_conv_ref(x, p["c5_1x1_w"], 1, "VALID"),
                            p["c5_bn1"]))
    c551 = _bn_ref(_conv_ref(t, p["c5_3x3_w"], g4, "SAME"), p["c5_bn2"])

    conv5x5 = _bn_ref(_conv_ref(c551, p["c52_w"], g4, "SAME"), p["c52_bn"])
    c772 = jax.nn.relu(_bn_ref(_conv_ref(c551, p["c72_w"], g4, "SAME"),
                               p["c72_bn"]))
    conv7x7 = _bn_ref(_conv_ref(c772, p["c73_w"], g4, "SAME"), p["c73_bn"])

    out = jax.nn.relu(jnp.concatenate([conv3x3, conv5x5, conv7x7], axis=-1))
    return jnp.transpose(out, (0, 3, 1, 2))


# ------------------------------------ main ----------------------------------

if __name__ == "__main__":
    key = jax.random.PRNGKey(0)
    k_x, k_p = jax.random.split(key)

    N, C_IN, H, W = 2, 8, 16, 16
    C_OUT = 32

    x = jax.random.normal(k_x, (N, C_IN, H, W), jnp.float32)   # NCHW (PyTorch)
    params = init_params(k_p, C_IN, C_OUT, groups=4, reduction=2)

    out = jax.block_until_ready(ssh_grouped_forward(x, params))
    assert out.shape == (N, C_OUT, H, W), out.shape

    ref = jax.block_until_ready(ssh_grouped_reference(x, params))
    max_err = float(jnp.max(jnp.abs(out - ref)))
    # bf16 MXU operands with f32 accumulation -> slightly relaxed tolerance.
    assert jnp.allclose(out, ref, atol=2e-2, rtol=2e-2), max_err

    print("KERNEL_OK")
</pallas_src>

<mosaic_0001>
module attributes {stable_mosaic.version = 11 : i64} {
  func.func @_ssh_fused_kernel(%arg0: i32, %arg1: memref<1x8x362xbf16, #tpu.memory_space<vmem>>, %arg2: memref<1x362xf32, #tpu.memory_space<vmem>>, %arg3: memref<16x8xbf16, #tpu.memory_space<vmem>>, %arg4: memref<16x1xf32, #tpu.memory_space<vmem>>, %arg5: memref<16x1xf32, #tpu.memory_space<vmem>>, %arg6: memref<16x144xbf16, #tpu.memory_space<vmem>>, %arg7: memref<16x1xf32, #tpu.memory_space<vmem>>, %arg8: memref<16x1xf32, #tpu.memory_space<vmem>>, %arg9: memref<8x8xbf16, #tpu.memory_space<vmem>>, %arg10: memref<8x1xf32, #tpu.memory_space<vmem>>, %arg11: memref<8x1xf32, #tpu.memory_space<vmem>>, %arg12: memref<8x72xbf16, #tpu.memory_space<vmem>>, %arg13: memref<8x1xf32, #tpu.memory_space<vmem>>, %arg14: memref<8x1xf32, #tpu.memory_space<vmem>>, %arg15: memref<8x72xbf16, #tpu.memory_space<vmem>>, %arg16: memref<8x1xf32, #tpu.memory_space<vmem>>, %arg17: memref<8x1xf32, #tpu.memory_space<vmem>>, %arg18: memref<8x72xbf16, #tpu.memory_space<vmem>>, %arg19: memref<8x1xf32, #tpu.memory_space<vmem>>, %arg20: memref<8x1xf32, #tpu.memory_space<vmem>>, %arg21: memref<8x72xbf16, #tpu.memory_space<vmem>>, %arg22: memref<8x1xf32, #tpu.memory_space<vmem>>, %arg23: memref<8x1xf32, #tpu.memory_space<vmem>>, %arg24: memref<1x32x324xf32, #tpu.memory_space<vmem>>) attributes {dimension_semantics = [#tpu.dimension_semantics<parallel>], iteration_bounds = array<i64: 2>, scalar_prefetch = 0 : i64, scratch_operands = 0 : i64, tpu.core_type = #tpu.core_type<tc>, window_params = [{transform_indices = @transform_0, window_bounds = array<i64: 1, 8, 362>}, {pipeline_mode = #tpu.pipeline_mode<synchronous>, transform_indices = @transform_1, window_bounds = array<i64: 1, 362>}, {pipeline_mode = #tpu.pipeline_mode<synchronous>, transform_indices = @transform_2, window_bounds = array<i64: 16, 8>}, {pipeline_mode = #tpu.pipeline_mode<synchronous>, transform_indices = @transform_3, window_bounds = array<i64: 16, 1>}, {pipeline_mode = #tpu.pipeline_mode<synchronous>, transform_indices = @transform_4, window_bounds = array<i64: 16, 1>}, {pipeline_mode = #tpu.pipeline_mode<synchronous>, transform_indices = @transform_5, window_bounds = array<i64: 16, 144>}, {pipeline_mode = #tpu.pipeline_mode<synchronous>, transform_indices = @transform_6, window_bounds = array<i64: 16, 1>}, {pipeline_mode = #tpu.pipeline_mode<synchronous>, transform_indices = @transform_7, window_bounds = array<i64: 16, 1>}, {pipeline_mode = #tpu.pipeline_mode<synchronous>, transform_indices = @transform_8, window_bounds = array<i64: 8, 8>}, {pipeline_mode = #tpu.pipeline_mode<synchronous>, transform_indices = @transform_9, window_bounds = array<i64: 8, 1>}, {pipeline_mode = #tpu.pipeline_mode<synchronous>, transform_indices = @transform_10, window_bounds = array<i64: 8, 1>}, {pipeline_mode = #tpu.pipeline_mode<synchronous>, transform_indices = @transform_11, window_bounds = array<i64: 8, 72>}, {pipeline_mode = #tpu.pipeline_mode<synchronous>, transform_indices = @transform_12, window_bounds = array<i64: 8, 1>}, {pipeline_mode = #tpu.pipeline_mode<synchronous>, transform_indices = @transform_13, window_bounds = array<i64: 8, 1>}, {pipeline_mode = #tpu.pipeline_mode<synchronous>, transform_indices = @transform_14, window_bounds = array<i64: 8, 72>}, {pipeline_mode = #tpu.pipeline_mode<synchronous>, transform_indices = @transform_15, window_bounds = array<i64: 8, 1>}, {pipeline_mode = #tpu.pipeline_mode<synchronous>, transform_indices = @transform_16, window_bounds = array<i64: 8, 1>}, {pipeline_mode = #tpu.pipeline_mode<synchronous>, transform_indices = @transform_17, window_bounds = array<i64: 8, 72>}, {pipeline_mode = #tpu.pipeline_mode<synchronous>, transform_indices = @transform_18, window_bounds = array<i64: 8, 1>}, {pipeline_mode = #tpu.pipeline_mode<synchronous>, transform_indices = @transform_19, window_bounds = array<i64: 8, 1>}, {pipeline_mode = #tpu.pipeline_mode<synchronous>, transform_indices = @transform_20, window_bounds = array<i64: 8, 72>}, {pipeline_mode = #tpu.pipeline_mode<synchronous>, transform_indices = @transform_21, window_bounds = array<i64: 8, 1>}, {pipeline_mode = #tpu.pipeline_mode<synchronous>, transform_indices = @transform_22, window_bounds = array<i64: 8, 1>}, {transform_indices = @transform_23, window_bounds = array<i64: 1, 32, 324>}]} {
    %c0 = arith.constant 0 : index
    %c0_0 = arith.constant 0 : index
    %c0_1 = arith.constant 0 : index
    %0 = vector.load %arg1[%c0, %c0_0, %c0_1] : memref<1x8x362xbf16, #tpu.memory_space<vmem>>, vector<1x8x362xbf16>
    %1 = vector.shape_cast %0 : vector<1x8x362xbf16> to vector<8x362xbf16>
    %c0_2 = arith.constant 0 : index
    %c0_3 = arith.constant 0 : index
    %2 = vector.load %arg2[%c0_2, %c0_3] : memref<1x362xf32, #tpu.memory_space<vmem>>, vector<1x362xf32>
    %3 = vector.extract_strided_slice %2 {offsets = [0, 19], sizes = [1, 324], strides = [1, 1]} : vector<1x362xf32> to vector<1x324xf32>
    %c0_4 = arith.constant 0 : index
    %c0_5 = arith.constant 0 : index
    %4 = vector.load %arg3[%c0_4, %c0_5] : memref<16x8xbf16, #tpu.memory_space<vmem>>, vector<16x8xbf16>
    %cst = arith.constant dense<0.000000e+00> : vector<16x362xf32>
    %5 = tpu.matmul %4, %1, %cst {dimension_numbers = #tpu.dot_dimension_numbers<[1], [0], [0], [1], [0, 0, 1, 1], [], []>} : vector<16x8xbf16>, vector<8x362xbf16>, vector<16x362xf32> -> vector<16x362xf32>
    %c0_6 = arith.constant 0 : index
    %c0_7 = arith.constant 0 : index
    %6 = vector.load %arg4[%c0_6, %c0_7] : memref<16x1xf32, #tpu.memory_space<vmem>>, vector<16x1xf32>
    %7 = vector.broadcast %6 : vector<16x1xf32> to vector<16x362xf32>
    %8 = arith.mulf %5, %7 : vector<16x362xf32>
    %c0_8 = arith.constant 0 : index
    %c0_9 = arith.constant 0 : index
    %9 = vector.load %arg5[%c0_8, %c0_9] : memref<16x1xf32, #tpu.memory_space<vmem>>, vector<16x1xf32>
    %10 = vector.broadcast %9 : vector<16x1xf32> to vector<16x362xf32>
    %11 = arith.addf %8, %10 : vector<16x362xf32>
    %cst_10 = arith.constant 0.000000e+00 : f32
    %12 = vector.broadcast %cst_10 : f32 to vector<16x362xf32>
    %13 = arith.maximumf %11, %12 : vector<16x362xf32>
    %14 = vector.broadcast %2 : vector<1x362xf32> to vector<16x362xf32>
    %15 = arith.mulf %13, %14 : vector<16x362xf32>
    %16 = vector.extract_strided_slice %15 {offsets = [0, 0], sizes = [16, 324], strides = [1, 1]} : vector<16x362xf32> to vector<16x324xf32>
    %17 = vector.extract_strided_slice %15 {offsets = [0, 1], sizes = [16, 324], strides = [1, 1]} : vector<16x362xf32> to vector<16x324xf32>
    %18 = vector.extract_strided_slice %15 {offsets = [0, 2], sizes = [16, 324], strides = [1, 1]} : vector<16x362xf32> to vector<16x324xf32>
    %19 = vector.extract_strided_slice %15 {offsets = [0, 18], sizes = [16, 324], strides = [1, 1]} : vector<16x362xf32> to vector<16x324xf32>
    %20 = vector.extract_strided_slice %15 {offsets = [0, 19], sizes = [16, 324], strides = [1, 1]} : vector<16x362xf32> to vector<16x324xf32>
    %21 = vector.extract_strided_slice %15 {offsets = [0, 20], sizes = [16, 324], strides = [1, 1]} : vector<16x362xf32> to vector<16x324xf32>
    %22 = vector.extract_strided_slice %15 {offsets = [0, 36], sizes = [16, 324], strides = [1, 1]} : vector<16x362xf32> to vector<16x324xf32>
    %23 = vector.extract_strided_slice %15 {offsets = [0, 37], sizes = [16, 324], strides = [1, 1]} : vector<16x362xf32> to vector<16x324xf32>
    %24 = vector.extract_strided_slice %15 {offsets = [0, 38], sizes = [16, 324], strides = [1, 1]} : vector<16x362xf32> to vector<16x324xf32>
    %25 = tpu.concatenate %16, %17, %18, %19, %20, %21, %22, %23, %24 in 0 : vector<16x324xf32>, vector<16x324xf32>, vector<16x324xf32>, vector<16x324xf32>, vector<16x324xf32>, vector<16x324xf32>, vector<16x324xf32>, vector<16x324xf32>, vector<16x324xf32> -> vector<144x324xf32>
    %26 = arith.truncf %25 : vector<144x324xf32> to vector<144x324xbf16>
    %c0_11 = arith.constant 0 : index
    %c0_12 = arith.constant 0 : index
    %27 = vector.load %arg6[%c0_11, %c0_12] : memref<16x144xbf16, #tpu.memory_space<vmem>>, vector<16x144xbf16>
    %cst_13 = arith.constant dense<0.000000e+00> : vector<16x324xf32>
    %28 = tpu.matmul %27, %26, %cst_13 {dimension_numbers = #tpu.dot_dimension_numbers<[1], [0], [0], [1], [0, 0, 1, 1], [], []>} : vector<16x144xbf16>, vector<144x324xbf16>, vector<16x324xf32> -> vector<16x324xf32>
    %c0_14 = arith.constant 0 : index
    %c0_15 = arith.constant 0 : index
    %29 = vector.load %arg7[%c0_14, %c0_15] : memref<16x1xf32, #tpu.memory_space<vmem>>, vector<16x1xf32>
    %30 = vector.broadcast %29 : vector<16x1xf32> to vector<16x324xf32>
    %31 = arith.mulf %28, %30 : vector<16x324xf32>
    %c0_16 = arith.constant 0 : index
    %c0_17 = arith.constant 0 : index
    %32 = vector.load %arg8[%c0_16, %c0_17] : memref<16x1xf32, #tpu.memory_space<vmem>>, vector<16x1xf32>
    %33 = vector.broadcast %32 : vector<16x1xf32> to vector<16x324xf32>
    %34 = arith.addf %31, %33 : vector<16x324xf32>
    %cst_18 = arith.constant 0.000000e+00 : f32
    %35 = vector.broadcast %cst_18 : f32 to vector<16x324xf32>
    %36 = arith.maximumf %34, %35 : vector<16x324xf32>
    %c0_19 = arith.constant 0 : index
    %c0_20 = arith.constant 0 : index
    %37 = vector.load %arg9[%c0_19, %c0_20] : memref<8x8xbf16, #tpu.memory_space<vmem>>, vector<8x8xbf16>
    %cst_21 = arith.constant dense<0.000000e+00> : vector<8x362xf32>
    %38 = tpu.matmul %37, %1, %cst_21 {dimension_numbers = #tpu.dot_dimension_numbers<[1], [0], [0], [1], [0, 0, 1, 1], [], []>} : vector<8x8xbf16>, vector<8x362xbf16>, vector<8x362xf32> -> vector<8x362xf32>
    %c0_22 = arith.constant 0 : index
    %c0_23 = arith.constant 0 : index
    %39 = vector.load %arg10[%c0_22, %c0_23] : memref<8x1xf32, #tpu.memory_space<vmem>>, vector<8x1xf32>
    %40 = vector.broadcast %39 : vector<8x1xf32> to vector<8x362xf32>
    %41 = arith.mulf %38, %40 : vector<8x362xf32>
    %c0_24 = arith.constant 0 : index
    %c0_25 = arith.constant 0 : index
    %42 = vector.load %arg11[%c0_24, %c0_25] : memref<8x1xf32, #tpu.memory_space<vmem>>, vector<8x1xf32>
    %43 = vector.broadcast %42 : vector<8x1xf32> to vector<8x362xf32>
    %44 = arith.addf %41, %43 : vector<8x362xf32>
    %cst_26 = arith.constant 0.000000e+00 : f32
    %45 = vector.broadcast %cst_26 : f32 to vector<8x362xf32>
    %46 = arith.maximumf %44, %45 : vector<8x362xf32>
    %47 = vector.broadcast %2 : vector<1x362xf32> to vector<8x362xf32>
    %48 = arith.mulf %46, %47 : vector<8x362xf32>
    %49 = vector.extract_strided_slice %48 {offsets = [0, 0], sizes = [8, 324], strides = [1, 1]} : vector<8x362xf32> to vector<8x324xf32>
    %50 = vector.extract_strided_slice %48 {offsets = [0, 1], sizes = [8, 324], strides = [1, 1]} : vector<8x362xf32> to vector<8x324xf32>
    %51 = vector.extract_strided_slice %48 {offsets = [0, 2], sizes = [8, 324], strides = [1, 1]} : vector<8x362xf32> to vector<8x324xf32>
    %52 = vector.extract_strided_slice %48 {offsets = [0, 18], sizes = [8, 324], strides = [1, 1]} : vector<8x362xf32> to vector<8x324xf32>
    %53 = vector.extract_strided_slice %48 {offsets = [0, 19], sizes = [8, 324], strides = [1, 1]} : vector<8x362xf32> to vector<8x324xf32>
    %54 = vector.extract_strided_slice %48 {offsets = [0, 20], sizes = [8, 324], strides = [1, 1]} : vector<8x362xf32> to vector<8x324xf32>
    %55 = vector.extract_strided_slice %48 {offsets = [0, 36], sizes = [8, 324], strides = [1, 1]} : vector<8x362xf32> to vector<8x324xf32>
    %56 = vector.extract_strided_slice %48 {offsets = [0, 37], sizes = [8, 324], strides = [1, 1]} : vector<8x362xf32> to vector<8x324xf32>
    %57 = vector.extract_strided_slice %48 {offsets = [0, 38], sizes = [8, 324], strides = [1, 1]} : vector<8x362xf32> to vector<8x324xf32>
    %58 = tpu.concatenate %49, %50, %51, %52, %53, %54, %55, %56, %57 in 0 : vector<8x324xf32>, vector<8x324xf32>, vector<8x324xf32>, vector<8x324xf32>, vector<8x324xf32>, vector<8x324xf32>, vector<8x324xf32>, vector<8x324xf32>, vector<8x324xf32> -> vector<72x324xf32>
    %59 = arith.truncf %58 : vector<72x324xf32> to vector<72x324xbf16>
    %c0_27 = arith.constant 0 : index
    %c0_28 = arith.constant 0 : index
    %60 = vector.load %arg12[%c0_27, %c0_28] : memref<8x72xbf16, #tpu.memory_space<vmem>>, vector<8x72xbf16>
    %cst_29 = arith.constant dense<0.000000e+00> : vector<8x324xf32>
    %61 = tpu.matmul %60, %59, %cst_29 {dimension_numbers = #tpu.dot_dimension_numbers<[1], [0], [0], [1], [0, 0, 1, 1], [], []>} : vector<8x72xbf16>, vector<72x324xbf16>, vector<8x324xf32> -> vector<8x324xf32>
    %c0_30 = arith.constant 0 : index
    %c0_31 = arith.constant 0 : index
    %62 = vector.load %arg13[%c0_30, %c0_31] : memref<8x1xf32, #tpu.memory_space<vmem>>, vector<8x1xf32>
    %63 = vector.broadcast %62 : vector<8x1xf32> to vector<8x324xf32>
    %64 = arith.mulf %61, %63 : vector<8x324xf32>
    %c0_32 = arith.constant 0 : index
    %c0_33 = arith.constant 0 : index
    %65 = vector.load %arg14[%c0_32, %c0_33] : memref<8x1xf32, #tpu.memory_space<vmem>>, vector<8x1xf32>
    %66 = vector.broadcast %65 : vector<8x1xf32> to vector<8x324xf32>
    %67 = arith.addf %64, %66 : vector<8x324xf32>
    %68 = vector.broadcast %3 : vector<1x324xf32> to vector<8x324xf32>
    %69 = arith.mulf %67, %68 : vector<8x324xf32>
    %cst_34 = arith.constant 0.000000e+00 : f32
    %70 = vector.broadcast %cst_34 : f32 to vector<8x19xf32>
    %71 = tpu.concatenate %70, %69, %70 in 1 : vector<8x19xf32>, vector<8x324xf32>, vector<8x19xf32> -> vector<8x362xf32>
    %72 = vector.extract_strided_slice %71 {offsets = [0, 0], sizes = [8, 324], strides = [1, 1]} : vector<8x362xf32> to vector<8x324xf32>
    %73 = vector.extract_strided_slice %71 {offsets = [0, 1], sizes = [8, 324], strides = [1, 1]} : vector<8x362xf32> to vector<8x324xf32>
    %74 = vector.extract_strided_slice %71 {offsets = [0, 2], sizes = [8, 324], strides = [1, 1]} : vector<8x362xf32> to vector<8x324xf32>
    %75 = vector.extract_strided_slice %71 {offsets = [0, 18], sizes = [8, 324], strides = [1, 1]} : vector<8x362xf32> to vector<8x324xf32>
    %76 = vector.extract_strided_slice %71 {offsets = [0, 19], sizes = [8, 324], strides = [1, 1]} : vector<8x362xf32> to vector<8x324xf32>
    %77 = vector.extract_strided_slice %71 {offsets = [0, 20], sizes = [8, 324], strides = [1, 1]} : vector<8x362xf32> to vector<8x324xf32>
    %78 = vector.extract_strided_slice %71 {offsets = [0, 36], sizes = [8, 324], strides = [1, 1]} : vector<8x362xf32> to vector<8x324xf32>
    %79 = vector.extract_strided_slice %71 {offsets = [0, 37], sizes = [8, 324], strides = [1, 1]} : vector<8x362xf32> to vector<8x324xf32>
    %80 = vector.extract_strided_slice %71 {offsets = [0, 38], sizes = [8, 324], strides = [1, 1]} : vector<8x362xf32> to vector<8x324xf32>
    %81 = tpu.concatenate %72, %73, %74, %75, %76, %77, %78, %79, %80 in 0 : vector<8x324xf32>, vector<8x324xf32>, vector<8x324xf32>, vector<8x324xf32>, vector<8x324xf32>, vector<8x324xf32>, vector<8x324xf32>, vector<8x324xf32>, vector<8x324xf32> -> vector<72x324xf32>
    %82 = arith.truncf %81 : vector<72x324xf32> to vector<72x324xbf16>
    %c0_35 = arith.constant 0 : index
    %c0_36 = arith.constant 0 : index
    %83 = vector.load %arg15[%c0_35, %c0_36] : memref<8x72xbf16, #tpu.memory_space<vmem>>, vector<8x72xbf16>
    %cst_37 = arith.constant dense<0.000000e+00> : vector<8x324xf32>
    %84 = tpu.matmul %83, %82, %cst_37 {dimension_numbers = #tpu.dot_dimension_numbers<[1], [0], [0], [1], [0, 0, 1, 1], [], []>} : vector<8x72xbf16>, vector<72x324xbf16>, vector<8x324xf32> -> vector<8x324xf32>
    %c0_38 = arith.constant 0 : index
    %c0_39 = arith.constant 0 : index
    %85 = vector.load %arg16[%c0_38, %c0_39] : memref<8x1xf32, #tpu.memory_space<vmem>>, vector<8x1xf32>
    %86 = vector.broadcast %85 : vector<8x1xf32> to vector<8x324xf32>
    %87 = arith.mulf %84, %86 : vector<8x324xf32>
    %c0_40 = arith.constant 0 : index
    %c0_41 = arith.constant 0 : index
    %88 = vector.load %arg17[%c0_40, %c0_41] : memref<8x1xf32, #tpu.memory_space<vmem>>, vector<8x1xf32>
    %89 = vector.broadcast %88 : vector<8x1xf32> to vector<8x324xf32>
    %90 = arith.addf %87, %89 : vector<8x324xf32>
    %cst_42 = arith.constant 0.000000e+00 : f32
    %91 = vector.broadcast %cst_42 : f32 to vector<8x324xf32>
    %92 = arith.maximumf %90, %91 : vector<8x324xf32>
    %93 = vector.extract_strided_slice %71 {offsets = [0, 0], sizes = [8, 324], strides = [1, 1]} : vector<8x362xf32> to vector<8x324xf32>
    %94 = vector.extract_strided_slice %71 {offsets = [0, 1], sizes = [8, 324], strides = [1, 1]} : vector<8x362xf32> to vector<8x324xf32>
    %95 = vector.extract_strided_slice %71 {offsets = [0, 2], sizes = [8, 324], strides = [1, 1]} : vector<8x362xf32> to vector<8x324xf32>
    %96 = vector.extract_strided_slice %71 {offsets = [0, 18], sizes = [8, 324], strides = [1, 1]} : vector<8x362xf32> to vector<8x324xf32>
    %97 = vector.extract_strided_slice %71 {offsets = [0, 19], sizes = [8, 324], strides = [1, 1]} : vector<8x362xf32> to vector<8x324xf32>
    %98 = vector.extract_strided_slice %71 {offsets = [0, 20], sizes = [8, 324], strides = [1, 1]} : vector<8x362xf32> to vector<8x324xf32>
    %99 = vector.extract_strided_slice %71 {offsets = [0, 36], sizes = [8, 324], strides = [1, 1]} : vector<8x362xf32> to vector<8x324xf32>
    %100 = vector.extract_strided_slice %71 {offsets = [0, 37], sizes = [8, 324], strides = [1, 1]} : vector<8x362xf32> to vector<8x324xf32>
    %101 = vector.extract_strided_slice %71 {offsets = [0, 38], sizes = [8, 324], strides = [1, 1]} : vector<8x362xf32> to vector<8x324xf32>
    %102 = tpu.concatenate %93, %94, %95, %96, %97, %98, %99, %100, %101 in 0 : vector<8x324xf32>, vector<8x324xf32>, vector<8x324xf32>, vector<8x324xf32>, vector<8x324xf32>, vector<8x324xf32>, vector<8x324xf32>, vector<8x324xf32>, vector<8x324xf32> -> vector<72x324xf32>
    %103 = arith.truncf %102 : vector<72x324xf32> to vector<72x324xbf16>
    %c0_43 = arith.constant 0 : index
    %c0_44 = arith.constant 0 : index
    %104 = vector.load %arg18[%c0_43, %c0_44] : memref<8x72xbf16, #tpu.memory_space<vmem>>, vector<8x72xbf16>
    %cst_45 = arith.constant dense<0.000000e+00> : vector<8x324xf32>
    %105 = tpu.matmul %104, %103, %cst_45 {dimension_numbers = #tpu.dot_dimension_numbers<[1], [0], [0], [1], [0, 0, 1, 1], [], []>} : vector<8x72xbf16>, vector<72x324xbf16>, vector<8x324xf32> -> vector<8x324xf32>
    %c0_46 = arith.constant 0 : index
    %c0_47 = arith.constant 0 : index
    %106 = vector.load %arg19[%c0_46, %c0_47] : memref<8x1xf32, #tpu.memory_space<vmem>>, vector<8x1xf32>
    %107 = vector.broadcast %106 : vector<8x1xf32> to vector<8x324xf32>
    %108 = arith.mulf %105, %107 : vector<8x324xf32>
    %c0_48 = arith.constant 0 : index
    %c0_49 = arith.constant 0 : index
    %109 = vector.load %arg20[%c0_48, %c0_49] : memref<8x1xf32, #tpu.memory_space<vmem>>, vector<8x1xf32>
    %110 = vector.broadcast %109 : vector<8x1xf32> to vector<8x324xf32>
    %111 = arith.addf %108, %110 : vector<8x324xf32>
    %cst_50 = arith.constant 0.000000e+00 : f32
    %112 = vector.broadcast %cst_50 : f32 to vector<8x324xf32>
    %113 = arith.maximumf %111, %112 : vector<8x324xf32>
    %114 = vector.broadcast %3 : vector<1x324xf32> to vector<8x324xf32>
    %115 = arith.mulf %113, %114 : vector<8x324xf32>
    %cst_51 = arith.constant 0.000000e+00 : f32
    %116 = vector.broadcast %cst_51 : f32 to vector<8x19xf32>
    %117 = tpu.concatenate %116, %115, %116 in 1 : vector<8x19xf32>, vector<8x324xf32>, vector<8x19xf32> -> vector<8x362xf32>
    %118 = vector.extract_strided_slice %117 {offsets = [0, 0], sizes = [8, 324], strides = [1, 1]} : vector<8x362xf32> to vector<8x324xf32>
    %119 = vector.extract_strided_slice %117 {offsets = [0, 1], sizes = [8, 324], strides = [1, 1]} : vector<8x362xf32> to vector<8x324xf32>
    %120 = vector.extract_strided_slice %117 {offsets = [0, 2], sizes = [8, 324], strides = [1, 1]} : vector<8x362xf32> to vector<8x324xf32>
    %121 = vector.extract_strided_slice %117 {offsets = [0, 18], sizes = [8, 324], strides = [1, 1]} : vector<8x362xf32> to vector<8x324xf32>
    %122 = vector.extract_strided_slice %117 {offsets = [0, 19], sizes = [8, 324], strides = [1, 1]} : vector<8x362xf32> to vector<8x324xf32>
    %123 = vector.extract_strided_slice %117 {offsets = [0, 20], sizes = [8, 324], strides = [1, 1]} : vector<8x362xf32> to vector<8x324xf32>
    %124 = vector.extract_strided_slice %117 {offsets = [0, 36], sizes = [8, 324], strides = [1, 1]} : vector<8x362xf32> to vector<8x324xf32>
    %125 = vector.extract_strided_slice %117 {offsets = [0, 37], sizes = [8, 324], strides = [1, 1]} : vector<8x362xf32> to vector<8x324xf32>
    %126 = vector.extract_strided_slice %117 {offsets = [0, 38], sizes = [8, 324], strides = [1, 1]} : vector<8x362xf32> to vector<8x324xf32>
    %127 = tpu.concatenate %118, %119, %120, %121, %122, %123, %124, %125, %126 in 0 : vector<8x324xf32>, vector<8x324xf32>, vector<8x324xf32>, vector<8x324xf32>, vector<8x324xf32>, vector<8x324xf32>, vector<8x324xf32>, vector<8x324xf32>, vector<8x324xf32> -> vector<72x324xf32>
    %128 = arith.truncf %127 : vector<72x324xf32> to vector<72x324xbf16>
    %c0_52 = arith.constant 0 : index
    %c0_53 = arith.constant 0 : index
    %129 = vector.load %arg21[%c0_52, %c0_53] : memref<8x72xbf16, #tpu.memory_space<vmem>>, vector<8x72xbf16>
    %cst_54 = arith.constant dense<0.000000e+00> : vector<8x324xf32>
    %130 = tpu.matmul %129, %128, %cst_54 {dimension_numbers = #tpu.dot_dimension_numbers<[1], [0], [0], [1], [0, 0, 1, 1], [], []>} : vector<8x72xbf16>, vector<72x324xbf16>, vector<8x324xf32> -> vector<8x324xf32>
    %c0_55 = arith.constant 0 : index
    %c0_56 = arith.constant 0 : index
    %131 = vector.load %arg22[%c0_55, %c0_56] : memref<8x1xf32, #tpu.memory_space<vmem>>, vector<8x1xf32>
    %132 = vector.broadcast %131 : vector<8x1xf32> to vector<8x324xf32>
    %133 = arith.mulf %130, %132 : vector<8x324xf32>
    %c0_57 = arith.constant 0 : index
    %c0_58 = arith.constant 0 : index
    %134 = vector.load %arg23[%c0_57, %c0_58] : memref<8x1xf32, #tpu.memory_space<vmem>>, vector<8x1xf32>
    %135 = vector.broadcast %134 : vector<8x1xf32> to vector<8x324xf32>
    %136 = arith.addf %133, %135 : vector<8x324xf32>
    %cst_59 = arith.constant 0.000000e+00 : f32
    %137 = vector.broadcast %cst_59 : f32 to vector<8x324xf32>
    %138 = arith.maximumf %136, %137 : vector<8x324xf32>
    %139 = tpu.concatenate %36, %92, %138 in 0 : vector<16x324xf32>, vector<8x324xf32>, vector<8x324xf32> -> vector<32x324xf32>
    %c0_60 = arith.constant 0 : index
    %c0_61 = arith.constant 0 : index
    %c0_62 = arith.constant 0 : index
    %140 = vector.load %arg24[%c0_60, %c0_61, %c0_62] : memref<1x32x324xf32, #tpu.memory_space<vmem>>, vector<1x32x324xf32>
    %141 = vector.shape_cast %140 : vector<1x32x324xf32> to vector<32x324xf32>
    %142 = vector.shape_cast %139 : vector<32x324xf32> to vector<1x32x324xf32>
    tpu.vector_store %arg24[%c0_60, %c0_61, %c0_62], %142 {strides = array<i32>} : memref<1x32x324xf32, #tpu.memory_space<vmem>>, vector<1x32x324xf32>,
    return
  }
  func.func @transform_0(%arg0: i32) -> (i32, i32, i32) {
    %c0_i32 = arith.constant 0 : i32
    %c0_i32_0 = arith.constant 0 : i32
    %c0_i32_1 = arith.constant 0 : i32
    return %arg0, %c0_i32, %c0_i32_0 : i32, i32, i32
  }
  func.func @transform_1(%arg0: i32) -> (i32, i32) {
    %c0_i32 = arith.constant 0 : i32
    %c0_i32_0 = arith.constant 0 : i32
    %c0_i32_1 = arith.constant 0 : i32
    return %c0_i32, %c0_i32_0 : i32, i32
  }
  func.func @transform_2(%arg0: i32) -> (i32, i32) {
    %c0_i32 = arith.constant 0 : i32
    %c0_i32_0 = arith.constant 0 : i32
    %c0_i32_1 = arith.constant 0 : i32
    return %c0_i32, %c0_i32_0 : i32, i32
  }
  func.func @transform_3(%arg0: i32) -> (i32, i32) {
    %c0_i32 = arith.constant 0 : i32
    %c0_i32_0 = arith.constant 0 : i32
    %c0_i32_1 = arith.constant 0 : i32
    return %c0_i32, %c0_i32_0 : i32, i32
  }
  func.func @transform_4(%arg0: i32) -> (i32, i32) {
    %c0_i32 = arith.constant 0 : i32
    %c0_i32_0 = arith.constant 0 : i32
    %c0_i32_1 = arith.constant 0 : i32
    return %c0_i32, %c0_i32_0 : i32, i32
  }
  func.func @transform_5(%arg0: i32) -> (i32, i32) {
    %c0_i32 = arith.constant 0 : i32
    %c0_i32_0 = arith.constant 0 : i32
    %c0_i32_1 = arith.constant 0 : i32
    return %c0_i32, %c0_i32_0 : i32, i32
  }
  func.func @transform_6(%arg0: i32) -> (i32, i32) {
    %c0_i32 = arith.constant 0 : i32
    %c0_i32_0 = arith.constant 0 : i32
    %c0_i32_1 = arith.constant 0 : i32
    return %c0_i32, %c0_i32_0 : i32, i32
  }
  func.func @transform_7(%arg0: i32) -> (i32, i32) {
    %c0_i32 = arith.constant 0 : i32
    %c0_i32_0 = arith.constant 0 : i32
    %c0_i32_1 = arith.constant 0 : i32
    return %c0_i32, %c0_i32_0 : i32, i32
  }
  func.func @transform_8(%arg0: i32) -> (i32, i32) {
    %c0_i32 = arith.constant 0 : i32
    %c0_i32_0 = arith.constant 0 : i32
    %c0_i32_1 = arith.constant 0 : i32
    return %c0_i32, %c0_i32_0 : i32, i32
  }
  func.func @transform_9(%arg0: i32) -> (i32, i32) {
    %c0_i32 = arith.constant 0 : i32
    %c0_i32_0 = arith.constant 0 : i32
    %c0_i32_1 = arith.constant 0 : i32
    return %c0_i32, %c0_i32_0 : i32, i32
  }
  func.func @transform_10(%arg0: i32) -> (i32, i32) {
    %c0_i32 = arith.constant 0 : i32
    %c0_i32_0 = arith.constant 0 : i32
    %c0_i32_1 = arith.constant 0 : i32
    return %c0_i32, %c0_i32_0 : i32, i32
  }
  func.func @transform_11(%arg0: i32) -> (i32, i32) {
    %c0_i32 = arith.constant 0 : i32
    %c0_i32_0 = arith.constant 0 : i32
    %c0_i32_1 = arith.constant 0 : i32
    return %c0_i32, %c0_i32_0 : i32, i32
  }
  func.func @transform_12(%arg0: i32) -> (i32, i32) {
    %c0_i32 = arith.constant 0 : i32
    %c0_i32_0 = arith.constant 0 : i32
    %c0_i32_1 = arith.constant 0 : i32
    return %c0_i32, %c0_i32_0 : i32, i32
  }
  func.func @transform_13(%arg0: i32) -> (i32, i32) {
    %c0_i32 = arith.constant 0 : i32
    %c0_i32_0 = arith.constant 0 : i32
    %c0_i32_1 = arith.constant 0 : i32
    return %c0_i32, %c0_i32_0 : i32, i32
  }
  func.func @transform_14(%arg0: i32) -> (i32, i32) {
    %c0_i32 = arith.constant 0 : i32
    %c0_i32_0 = arith.constant 0 : i32
    %c0_i32_1 = arith.constant 0 : i32
    return %c0_i32, %c0_i32_0 : i32, i32
  }
  func.func @transform_15(%arg0: i32) -> (i32, i32) {
    %c0_i32 = arith.constant 0 : i32
    %c0_i32_0 = arith.constant 0 : i32
    %c0_i32_1 = arith.constant 0 : i32
    return %c0_i32, %c0_i32_0 : i32, i32
  }
  func.func @transform_16(%arg0: i32) -> (i32, i32) {
    %c0_i32 = arith.constant 0 : i32
    %c0_i32_0 = arith.constant 0 : i32
    %c0_i32_1 = arith.constant 0 : i32
    return %c0_i32, %c0_i32_0 : i32, i32
  }
  func.func @transform_17(%arg0: i32) -> (i32, i32) {
    %c0_i32 = arith.constant 0 : i32
    %c0_i32_0 = arith.constant 0 : i32
    %c0_i32_1 = arith.constant 0 : i32
    return %c0_i32, %c0_i32_0 : i32, i32
  }
  func.func @transform_18(%arg0: i32) -> (i32, i32) {
    %c0_i32 = arith.constant 0 : i32
    %c0_i32_0 = arith.constant 0 : i32
    %c0_i32_1 = arith.constant 0 : i32
    return %c0_i32, %c0_i32_0 : i32, i32
  }
  func.func @transform_19(%arg0: i32) -> (i32, i32) {
    %c0_i32 = arith.constant 0 : i32
    %c0_i32_0 = arith.constant 0 : i32
    %c0_i32_1 = arith.constant 0 : i32
    return %c0_i32, %c0_i32_0 : i32, i32
  }
  func.func @transform_20(%arg0: i32) -> (i32, i32) {
    %c0_i32 = arith.constant 0 : i32
    %c0_i32_0 = arith.constant 0 : i32
    %c0_i32_1 = arith.constant 0 : i32
    return %c0_i32, %c0_i32_0 : i32, i32
  }
  func.func @transform_21(%arg0: i32) -> (i32, i32) {
    %c0_i32 = arith.constant 0 : i32
    %c0_i32_0 = arith.constant 0 : i32
    %c0_i32_1 = arith.constant 0 : i32
    return %c0_i32, %c0_i32_0 : i32, i32
  }
  func.func @transform_22(%arg0: i32) -> (i32, i32) {
    %c0_i32 = arith.constant 0 : i32
    %c0_i32_0 = arith.constant 0 : i32
    %c0_i32_1 = arith.constant 0 : i32
    return %c0_i32, %c0_i32_0 : i32, i32
  }
  func.func @transform_23(%arg0: i32) -> (i32, i32, i32) {
    %c0_i32 = arith.constant 0 : i32
    %c0_i32_0 = arith.constant 0 : i32
    %c0_i32_1 = arith.constant 0 : i32
    return %arg0, %c0_i32, %c0_i32_0 : i32, i32, i32
  }
}

</mosaic_0001>

<bundles_post_ra>
// kernel: tpu_custom_call.1
= control target key start
LH: loop header
LB: loop body
LE: loop exit
PB: predicated region body
PF: predicated region fallthrough
CT: control target
= control target key end

     0   :  { %s3577_s0 = inlined_call_operand.vmem [shape: bf16[2,8,362], index: 0, kind: input, shape index: {}]   ;;  %s3578_s1 = inlined_call_operand.vmem [shape: f32[1,362], index: 1, kind: input, shape index: {}]   ;;  %s3579_s2 = inlined_call_operand.vmem [shape: bf16[16,8], index: 2, kind: input, shape index: {}]   ;;  %s3580_s3 = inlined_call_operand.vmem [shape: f32[16,1], index: 3, kind: input, shape index: {}]   ;;  %s3581_s4 = inlined_call_operand.vmem [shape: f32[16,1], index: 4, kind: input, shape index: {}]   ;;  %s3582_s5 = inlined_call_operand.vmem [shape: bf16[16,144], index: 5, kind: input, shape index: {}]   ;;  %s3583_s6 = inlined_call_operand.vmem [shape: f32[16,1], index: 6, kind: input, shape index: {}]   ;;  %s3584_s7 = inlined_call_operand.vmem [shape: f32[16,1], index: 7, kind: input, shape index: {}]   ;;  %s3585_s8 = inlined_call_operand.vmem [shape: bf16[8,8], index: 8, kind: input, shape index: {}]   ;;  %s3586_s9 = inlined_call_operand.vmem [shape: f32[8,1], index: 9, kind: input, shape index: {}]   ;;  %s3587_s10 = inlined_call_operand.vmem [shape: f32[8,1], index: 10, kind: input, shape index: {}]   ;;  %s3588_s11 = inlined_call_operand.vmem [shape: bf16[8,72], index: 11, kind: input, shape index: {}]   ;;  %s3589_s12 = inlined_call_operand.vmem [shape: f32[8,1], index: 12, kind: input, shape index: {}]   ;;  %s3590_s13 = inlined_call_operand.vmem [shape: f32[8,1], index: 13, kind: input, shape index: {}]   ;;  %s3591_s14 = inlined_call_operand.vmem [shape: bf16[8,72], index: 14, kind: input, shape index: {}]   ;;  %s3592_s15 = inlined_call_operand.vmem [shape: f32[8,1], index: 15, kind: input, shape index: {}]   ;;  %s3593_s16 = inlined_call_operand.vmem [shape: f32[8,1], index: 16, kind: input, shape index: {}]   ;;  %s3594_s17 = inlined_call_operand.vmem [shape: bf16[8,72], index: 17, kind: input, shape index: {}]   ;;  %s3595_s18 = inlined_call_operand.vmem [shape: f32[8,1], index: 18, kind: input, shape index: {}]   ;;  %s3596_s19 = inlined_call_operand.vmem [shape: f32[8,1], index: 19, kind: input, shape index: {}]   ;;  %s3597_s20 = inlined_call_operand.vmem [shape: bf16[8,72], index: 20, kind: input, shape index: {}]   ;;  %s3598_s21 = inlined_call_operand.vmem [shape: f32[8,1], index: 21, kind: input, shape index: {}]   ;;  %s3599_s22 = inlined_call_operand.vmem [shape: f32[8,1], index: 22, kind: input, shape index: {}]   ;;  %s3600_s23 = inlined_call_operand.hbm [shape: f32[2,32,324], index: 23, kind: output, shape index: {}]  }
   0x1   :  { %3630 = sst [smem:[#allocation12_spill]] %s3577_s0 }
   0x2   :  { %3631 = sst [smem:[#allocation13_spill]] %s3578_s1 }
   0x3   :  { %3632 = sst [smem:[#allocation14_spill]] %s3579_s2 }
   0x4   :  { %3633 = sst [smem:[#allocation15_spill]] %s3580_s3 }
   0x5   :  { %3634 = sst [smem:[#allocation16_spill]] %s3581_s4 }
   0x6   :  { %3635 = sst [smem:[#allocation17_spill]] %s3582_s5 }
   0x7   :  { %3636 = sst [smem:[#allocation18_spill]] %s3583_s6 }
   0x8   :  { %3637 = sst [smem:[#allocation19_spill]] %s3584_s7 }
   0x9   :  { %3638 = sst [smem:[#allocation20_spill]] %s3585_s8 }
   0xa   :  { %3639 = sst [smem:[#allocation21_spill]] %s3586_s9 }
   0xb   :  { %3640 = sst [smem:[#allocation22_spill]] %s3587_s10 }
   0xc   :  { %3641 = sst [smem:[#allocation23_spill]] %s3600_s23 }
   0xd   :  { %28 = vsyncpa [#allocation3], 0 }
   0xe   :  { %30 = vsyncpa [#allocation3 + $0x1], 0  ;;  %s2927_s4 = smov 0   ;;  %s2929_s30 = smov 0  }
   0xf   :  { %s2931_s24 = smov 0   ;;  %s2933_s25 = smov 0  }
  0x10 LB: > { %3642 = sst [smem:[#allocation5_spill]] %s2777_s4  ;;  %s2948_s5 = sadd.s32 4294967295, %s2789_s25   ;;  %s2789_s25 = sphi %s2933_s25, %s3679_s25   ;;  %s2785_s24 = sphi %s2931_s24, %s3681_s24   ;;  %s2781_s30 = sphi %s2929_s30, %s3683_s30   ;;  %s2777_s4 = sphi %s2927_s4, %s3682_s4  }
  0x11   : > { %3643 = sst [smem:[#allocation6_spill]] %s2785_s24  ;;  %s2262_s1 = sadd.s32 4294967294, %s2789_s25  }
  0x12   : > { %3644 = sst [smem:[#allocation7_spill]] %s2789_s25  ;;  %s2952_s26 = sadd.s32 1, %s2789_s25  }
  0x13   : > { %3645 = sst [smem:[#allocation8_spill]] %s2952_s26  ;;  %s531_s2 = sadd.s32 1, %s2785_s24 }
  0x14   : > { %s528_s6 = ssub.s32 %s2789_s25, %s2952_s26  ;;  %p541_p0 = scmp.ne.s32.totalorder %s2785_s24, %s2781_s30 }
  0x15   : > { %p529_p1 = scmp.eq.s32.totalorder %s528_s6, 0  ;;  %p542_p2 = scmp.eq.s32.totalorder %s2948_s5, 1 }
  0x16   : > { %p547_p3 = scmp.ne.s32.totalorder %s2781_s30, %s2777_s4  ;;  %p548_p4 = scmp.eq.s32.totalorder %s2262_s1, 1 }
  0x17   : > { %s2963_s27 = scalar_select %p529_p1, %s2785_s24, %s531_s2  }
  0x18   : > { %p2965_p5 = por %p542_p2, %p541_p0  ;;  %p2969_p6 = por %p548_p4, %p547_p3 }
  0x19   : > { %3646 = sst [smem:[#allocation9_spill]] %s2963_s27  ;;  %p2265_p7 = scmp.ge.s32.totalorder %s2789_s25, 1 }
  0x1a   : > { %s3647_s7 = scalar_select %p2965_p5, 1, 0 }
  0x1b   : > { %s3649_s28 = scalar_select %p2969_p6, 1, 0 }
  0x1c   : > { %3648 = sst [smem:[#allocation10_spill]] %s3647_s7  ;;  %p640_p8 = scmp.lt.s32.totalorder %s2789_s25, 3 }
  0x1d   : > { %3650 = sst [smem:[#allocation11_spill]] %s3649_s28 }
  0x1e   : > { %p641_p9 = pnand %p2265_p7, %p640_p8 }
  0x1f   : > { %p704_p10 = scmp.lt.s32.totalorder (!%p641_p9), %s2948_s5, 1  ;;  %s3651_s0 = sld [smem:[#allocation15_spill]] (!%p641_p9) }
  0x20   : > { %644 = sbr.rel (%p641_p9) target bundleno = 1957 (0x7a5), region = 112  ;;  %s3652_s27 = sld [smem:[#allocation16_spill]] (!%p641_p9) }
  0x21   : > { %s3653_s23 = sld [smem:[#allocation12_spill]] (!%p641_p9)  ;;  %s2794_s25 = smov (!%p641_p9), 92  }
  0x22   : > { %s3619_s2 = smov (!%p641_p9), 109   ;;  %s3625_s6 = smov (!%p641_p9), 108  }
  0x23   : > { %s3615_s29 = smov (!%p641_p9), 110   ;;  %s3617_s3 = smov (!%p641_p9), 126  }
  0x24   : > { %s2800_s26 = smov (!%p641_p9), 127   ;;  %s3621_s4 = smov (!%p641_p9), 90  }
  0x25   : > { %v2791_v0 = vmov 0.0   ;;  %v2792_v1 = vmov 0   ;;  %v826_v2 = vld [vmem:[%s3651_s0] sm:$0xff]  ;;  %s705_s1 = scalar_select %p704_p10, %s2948_s5, 1  ;;  %vm2793_vm0 = vmmov 0   ;;  %v827_v4 = vld [vmem:[%s3651_s0 + $0x8] sm:$0xff]  ;;  %v869_v13 = vlaneseq }
  0x26   : > { %2345 = vmatprep.subr.bf16.mxu1 %v2791_v0  ;;  %774 = vmatprep.mubr.bf16.mxu0 %v2792_v1  ;;  %v844_v3 = vld [vmem:[%s3652_s27] sm:$0xff]  ;;  %v845_v5 = vld [vmem:[%s3652_s27 + $0x8] sm:$0xff]  ;;  %vm732_vm1 = vcmask 1043456   ;;  %vm728_vm2 = vcmask 64512   ;;  %vm1118_vm3 = vcmask 130048   ;;  %s3657_s9 = sld [smem:[#allocation21_spill]] }
  0x27   : > { %2347 = vmatprep.mubr.msk.bf16.mxu1 %vm2793_vm0, %v2791_v0  ;;  %2470 = vset.pattern.permute.xlu0 %v2792_v1  ;;  %s2414_s24 = smul.u32 12, %s705_s1  ;;  %s3654_s1 = sld [smem:[#allocation14_spill]]  ;;  %v870_v16 = vshrl.u32 %v869_v13, 7  ;;  %vm1046_vm4 = vcmask 744448   ;;  %vm1023_vm5 = vcmask 752640   ;;  %vm1000_vm6 = vcmask 883712  }
  0x28   : > { %830 = vperm.xlu0 %2470, %v826_v2   ;;  %2471 = vset.pattern.permute.xlu1 %v2792_v1  ;;  %s3658_s10 = sld [smem:[#allocation22_spill]]  ;;  %vm977_vm7 = vcmask 891904   ;;  %vm954_vm8 = vcmask 900096   ;;  %vm3627_vm9 = vcmask 1031168   ;;  %vm908_vm10 = vcmask 1039360   ;;  %s3663_s28 = smov 90  }
  0x29   : > { %848 = vperm.xlu1 %2471, %v844_v3   ;;  %s708_s7 = scalar_lea.vmem %s3653_s23, %s2414_s24  ;;  %v879_v18 = vsub.s32 2, %v870_v16  ;;  %v875_v22 = vsub.s32 1, %v870_v16  ;;  %s3655_s24 = sld [smem:[#allocation13_spill]]  ;;  %v871_v46 = vsub.s32 0, %v870_v16  ;;  %vm1069_vm11 = vcmask 736256  }
  0x2a   : > { %v710_v6 = vld [vmem:[%s708_s7] sm:$0xff]  ;;  %v2724_v7 = vld [vmem:[%s708_s7 + $0x8] ss:$0 sps:$4 sm:$0xff]   ;;  %s3623_s7 = smov 91   ;;  %s3656_s23 = sld [smem:[#allocation17_spill]]  ;;  %vm1464_vm12 = vcmask 588800  }
  0x2b   : > { %v2998_v8 = vcombine.high %v710_v6, %v710_v6  ;;  %v2268_v9 = vcombine.low %v710_v6, %v710_v6  ;;  %v3001_v10 = vsel %vm732_vm1, %v2724_v7, 0  ;;  %s3659_s8 = sld [smem:[#allocation20_spill]]  ;;  %vm1599_vm13 = vcmask 154624  }
  0x2c   : > { %835 = vperm.xlu0 %2470, %v827_v4   ;;  %2346 = vmatpush3.bf16.msra.mxu1 %v3001_v10  ;;  %v1333_v3 = vld [vmem:[%s3657_s9] sm:$0xff]  ;;  %vm1606_vm14 = vcmask 711680   ;;  %vm2285_vm15 = vmneg %vm1599_vm13  ;;  %s3675_s0 = sld [smem:[#allocation23_spill]] }
  0x2d   : > { %853 = vperm.xlu1 %2471, %v845_v5   ;;  %v2725_v11 = vld [vmem:[%s3654_s1] sm:$0xff]   ;;  %2271 = vmatprep.subr.msk.bf16.mxu0 %vm732_vm1, %v2998_v8  ;;  %v3009_v12 = vsel %vm732_vm1, %v2268_v9, 0  ;;  %s3660_s1 = smov 109  }
  0x2e   : > { %757 = vmatpush1.bf16.msra.mxu0 %v3009_v12  ;;  %1165 = vmatprep.subr.bf16.mxu1 %v2792_v1  ;;  %v1342_v4 = vld [vmem:[%s3658_s10] sm:$0xff] }
  0x2f   : > { %2348 = vmatmul.mubr.msk.bf16.vlgmr.msra.gmra.mxu1 %vm728_vm2, %v2725_v11  ;;  %v712_v24 = vld [vmem:[%s3655_s24] sm:$0x7]  ;;  %s3661_s24 = smov 126  }
  0x30   : > { %v3019_v27 = vrot.slane %v712_v24, %v879_v18  ;;  %v3021_v36 = vrot.slane %v712_v24, %v875_v22  ;;  %v3031_v54 = vrot.slane %v712_v24, %v871_v46  ;;  %v2726_v2 = vld [vmem:[%s3656_s23 + $0x4] ss:$8 sps:$4 sm:$0xff]  }
  0x31   : > { %2272 = vmatmul.mubr.msk.bf16.vlgmr.msra.gmra.mxu0 %vm728_vm2, %v2725_v11  ;;  %2277 = vmatprep.mubr.msk.bf16.mxu1 %vm1118_vm3, %v2726_v2 }
  0x32   : > { %2276 = vmatprep.mubr.msk.bf16.mxu0 %vm1118_vm3, %v2726_v2 }
  0xa3   : > { %v831_v14 = vpop.permute.xlu0 %830 }
  0xa4   : > { %v849_v15 = vpop.permute.xlu1 %848 }
  0xa7   : > { %v836_v21 = vpop.permute.xlu0 %835 }
  0xa8   : > { %v854_v29 = vpop.permute.xlu1 %853 }
  0xef   : > { %v819_v17 = vpop.f32.mrf.mxu1 }
  0xf0   : > { %v840_v20 = vmul.f32 %v831_v14, %v819_v17 }
  0xf1   : > { %v776_v19 = vpop.f32.mrf.mxu0  ;;  %v2349_v23 = vpop.f32.mrf.mxu1 }
  0xf2   : > { %v858_v25 = vadd.f32 %v849_v15, %v840_v20  ;;  %v838_v31 = vmul.f32 %v831_v14, %v776_v19 }
  0xf3   : > { %v778_v26 = vpop.f32.mrf.mxu0  ;;  %v822_v30 = vpop.f32.mrf.mxu1 }
  0xf4   : > { %v839_v28 = vmul.f32 %v831_v14, %v778_v26  ;;  %v864_v32 = vmax.f32 %v858_v25, 0.0  ;;  %v843_v34 = vmul.f32 %v836_v21, %v822_v30  ;;  %v856_v45 = vadd.f32 %v849_v15, %v838_v31 }
  0xf5   : > { %v780_v33 = vpop.f32.mrf.mxu0  ;;  %v2350_v38 = vpop.f32.mrf.mxu1 }
  0xf6   : > { %v857_v35 = vadd.f32 %v849_v15, %v839_v28  ;;  %v841_v37 = vmul.f32 %v836_v21, %v780_v33  ;;  %v861_v39 = vadd.f32 %v854_v29, %v843_v34  ;;  %v3024_v41 = vmul.f32 %v3019_v27, %v864_v32 }
  0xf7   : > { %v782_v40 = vpop.f32.mrf.mxu0  ;;  %v862_v53 = vmax.f32 %v856_v45, 0.0 }
  0xf8   : > { %v863_v42 = vmax.f32 %v857_v35, 0.0  ;;  %v859_v43 = vadd.f32 %v854_v29, %v841_v37  ;;  %v842_v44 = vmul.f32 %v836_v21, %v782_v40  ;;  %v867_v50 = vmax.f32 %v861_v39, 0.0 }
  0xf9   : > { %v3045_v58 = vmul.f32 %v3031_v54, %v862_v53 }
  0xfa   : > { %v3027_v47 = vmul.f32 %v3021_v36, %v863_v42  ;;  %v860_v48 = vadd.f32 %v854_v29, %v842_v44  ;;  %v865_v49 = vmax.f32 %v859_v43, 0.0  ;;  %v3039_v56 = vmul.f32 %v3019_v27, %v867_v50 }
  0xfc   : > { %v866_v51 = vmax.f32 %v860_v48, 0.0  ;;  %v2477_v52 = vpack.i.bf16 %v3024_v41, %v3027_v47  ;;  %v3036_v55 = vmul.f32 %v3031_v54, %v865_v49  ;;  %v1082_v59 = vpack.c.bf16 %v3039_v56, %v3024_v41 }
  0xfe   : > { %2478 = vrot.lane.b32.xlu1 %v2477_v52, %s2794_s25  ;;  %2473 = vrot.lane.b32.xlu0 %v2477_v52, %s3623_s7  ;;  %v3042_v57 = vmul.f32 %v3021_v36, %v866_v51  ;;  %v1080_v61 = vpack.c.bf16 %v3036_v55, %v3045_v58  ;;  %v2497_v62 = vpack.i.bf16 %v3036_v55, %v3045_v58  ;;  %v1248_v55 = vld [vmem:[%s3659_s8] sm:$0xf] }
 0x100   : > { %v1081_v60 = vpack.c.bf16 %v3042_v57, %v3027_v47  ;;  %v2507_v63 = vpack.i.bf16 %v3039_v56, %v3042_v57 }
 0x102   : > { %2488 = vrot.lane.b32.xlu1 %v2477_v52, %s3619_s2  ;;  %2483 = vrot.lane.b32.xlu0 %v2477_v52, %s3625_s6 }
 0x106   : > { %2498 = vrot.lane.b32.xlu1 %v2497_v62, %s2794_s25  ;;  %2493 = vrot.lane.b32.xlu0 %v2497_v62, %s3623_s7 }
 0x10a   : > { %2503 = vrot.lane.b32.xlu0 %v2497_v62, %s3625_s6  ;;  %2508 = vrot.lane.b32.xlu1 %v2507_v63, %s3623_s7 }
 0x10e   : > { %2518 = vrot.lane.b32.xlu0 %v2507_v63, %s2794_s25  ;;  %2513 = vrot.lane.b32.xlu1 %v2497_v62, %s3619_s2 }
 0x112   : > { %2523 = vrot.lane.b32.xlu0 %v2477_v52, %s3615_s29  ;;  %2528 = vrot.lane.b32.xlu1 %v2507_v63, %s3625_s6 }
 0x116   : > { %2533 = vrot.lane.b32.xlu0 %v2507_v63, %s3619_s2  ;;  %2543 = vrot.lane.b32.xlu1 %v2477_v52, %s3617_s3  ;;  %s3662_s2 = smov 110  }
 0x11a   : > { %2538 = vrot.lane.b32.xlu0 %v2497_v62, %s3615_s29  ;;  %2548 = vrot.lane.b32.xlu1 %v2507_v63, %s3615_s29  ;;  %s3670_s29 = sld [smem:[#allocation18_spill]] }
 0x11e   : > { %2558 = vrot.lane.b32.xlu0 %v2507_v63, %s3617_s3  ;;  %2553 = vrot.lane.b32.xlu1 %v2497_v62, %s3617_s3  ;;  %s2802_s3 = smov 19  }
 0x122   : > { %2563 = vrot.lane.b32.xlu0 %v2477_v52, %s2800_s26  ;;  %2568 = vrot.lane.b32.xlu1 %v2507_v63, %s2800_s26 }
 0x126   : > { %2573 = vrot.lane.b32.xlu0 %v2497_v62, %s2800_s26  ;;  %2578 = vrot.lane.b32.xlu1 %v2477_v52, %s3621_s4 }
 0x12a   : > { %2583 = vrot.lane.b32.xlu0 %v2507_v63, %s3621_s4  ;;  %2588 = vrot.lane.b32.xlu1 %v2497_v62, %s3621_s4 }
 0x12e   : > { %1336 = vperm.xlu0 %2470, %v1333_v3   ;;  %1345 = vperm.xlu1 %2471, %v1342_v4  }
 0x170   : > { %v2479_v5 = vpop.permute.xlu1 %2478  ;;  %v2474_v6 = vpop.permute.xlu0 %2473 }
 0x171   : > { %v2476_v14 = vunpack.i.h.bf16 %v2474_v6  ;;  %v2475_v15 = vunpack.i.l.bf16 %v2474_v6  ;;  %v2481_v22 = vunpack.i.h.bf16 %v2479_v5  ;;  %v2480_v23 = vunpack.i.l.bf16 %v2479_v5 }
 0x173   : > { %v1048_v25 = vsel %vm1046_vm4, %v2475_v15, %v2476_v14  ;;  %v1025_v43 = vsel %vm1023_vm5, %v2480_v23, %v2481_v22 }
 0x174   : > { %v3088_v7 = vpop.permute.xlu1 %2488  ;;  %v2484_v9 = vpop.permute.xlu0 %2483 }
 0x175   : > { %v2486_v39 = vunpack.i.h.bf16 %v2484_v9  ;;  %v2485_v40 = vunpack.i.l.bf16 %v2484_v9  ;;  %v2491_v2 = vunpack.i.h.bf16 %v3088_v7  ;;  %v2490_v3 = vunpack.i.l.bf16 %v3088_v7 }
 0x177   : > { %v1002_v5 = vsel %vm1000_vm6, %v2485_v40, %v2486_v39 }
 0x178   : > { %v2499_v11 = vpop.permute.xlu1 %2498  ;;  %v2494_v13 = vpop.permute.xlu0 %2493 }
 0x179   : > { %v2495_v16 = vunpack.i.l.bf16 %v2494_v13  ;;  %v2496_v19 = vunpack.i.h.bf16 %v2494_v13  ;;  %v2500_v24 = vunpack.i.l.bf16 %v2499_v11  ;;  %v2501_v35 = vunpack.i.h.bf16 %v2499_v11 }
 0x17b   : > { %v1047_v26 = vsel %vm1046_vm4, %v2495_v16, %v2475_v15  ;;  %v1024_v44 = vsel %vm1023_vm5, %v2500_v24, %v2480_v23 }
 0x17c   : > { %v2504_v17 = vpop.permute.xlu0 %2503  ;;  %v2509_v18 = vpop.permute.xlu1 %2508 }
 0x17d   : > { %v2511_v20 = vunpack.i.h.bf16 %v2509_v18  ;;  %v2510_v21 = vunpack.i.l.bf16 %v2509_v18  ;;  %v2505_v42 = vunpack.i.l.bf16 %v2504_v17  ;;  %v2506_v53 = vunpack.i.h.bf16 %v2504_v17 }
 0x17f   : > { %v1103_v28 = vpack.c.bf16 %v2511_v20, %v2476_v14  ;;  %v1049_v29 = vsel %vm1046_vm4, %v2496_v19, %v2510_v21  ;;  %v1050_v30 = vsel %vm1046_vm4, %v2510_v21, %v2511_v20  ;;  %v1001_v4 = vsel %vm1000_vm6, %v2505_v42, %v2485_v40 }
 0x180   : > { %v1101_v31 = vpack.c.bf16 %v1049_v29, %v1047_v26  ;;  %v2519_v32 = vpop.permute.xlu0 %2518  ;;  %v2514_v33 = vpop.permute.xlu1 %2513  ;;  %v1102_v34 = vpack.c.bf16 %v1050_v30, %v1048_v25 }
 0x181   : > { %v2521_v37 = vunpack.i.h.bf16 %v2519_v32  ;;  %v2520_v38 = vunpack.i.l.bf16 %v2519_v32  ;;  %1166 = vmatpush1.bf16.msra.mxu1 %v1103_v28  ;;  %v2515_v6 = vunpack.i.l.bf16 %v2514_v33  ;;  %v2516_v18 = vunpack.i.h.bf16 %v2514_v33 }
 0x182   : > { %1122 = vmatprep.subr.bf16.mxu0 %v1102_v34  ;;  %1167 = vmatprep.subr.bf16.mxu1 %v2792_v1 }
 0x183   : > { %v1100_v45 = vpack.c.bf16 %v2521_v37, %v2481_v22  ;;  %v1026_v46 = vsel %vm1023_vm5, %v2501_v35, %v2520_v38  ;;  %1123 = vmatpush1.bf16.msra.mxu0 %v1101_v31  ;;  %v1027_v48 = vsel %vm1023_vm5, %v2520_v38, %v2521_v37  ;;  %v979_v22 = vsel %vm977_vm7, %v2490_v3, %v2491_v2 }
 0x184   : > { %v1098_v49 = vpack.c.bf16 %v1026_v46, %v1024_v44  ;;  %v2524_v50 = vpop.permute.xlu0 %2523  ;;  %v2529_v51 = vpop.permute.xlu1 %2528  ;;  %v1099_v52 = vpack.c.bf16 %v1027_v48, %v1025_v43  ;;  %v978_v23 = vsel %vm977_vm7, %v2515_v6, %v2490_v3 }
 0x185   : > { %v2531_v62 = vunpack.i.h.bf16 %v2529_v51  ;;  %v2530_v63 = vunpack.i.l.bf16 %v2529_v51  ;;  %1168 = vmatpush1.bf16.msra.mxu1 %v1100_v45  ;;  %v2526_v20 = vunpack.i.h.bf16 %v2524_v50  ;;  %v2525_v21 = vunpack.i.l.bf16 %v2524_v50 }
 0x186   : > { %1124 = vmatprep.subr.bf16.mxu0 %v1099_v52  ;;  %1169 = vmatprep.subr.bf16.mxu1 %v2792_v1 }
 0x187   : > { %v1097_v9 = vpack.c.bf16 %v2531_v62, %v2486_v39  ;;  %v1003_v11 = vsel %vm1000_vm6, %v2506_v53, %v2530_v63  ;;  %1125 = vmatpush1.bf16.msra.mxu0 %v1098_v49  ;;  %v1004_v13 = vsel %vm1000_vm6, %v2530_v63, %v2531_v62  ;;  %v956_v39 = vsel %vm954_vm8, %v2525_v21, %v2526_v20 }
 0x188   : > { %v1095_v14 = vpack.c.bf16 %v1003_v11, %v1001_v4  ;;  %v2534_v15 = vpop.permute.xlu0 %2533  ;;  %v2544_v16 = vpop.permute.xlu1 %2543  ;;  %v1096_v17 = vpack.c.bf16 %v1004_v13, %v1002_v5 }
 0x189   : > { %v2536_v7 = vunpack.i.h.bf16 %v2534_v15  ;;  %v2535_v19 = vunpack.i.l.bf16 %v2534_v15  ;;  %1170 = vmatpush1.bf16.msra.mxu1 %v1097_v9  ;;  %v2546_v37 = vunpack.i.h.bf16 %v2544_v16  ;;  %v2545_v38 = vunpack.i.l.bf16 %v2544_v16 }
 0x18a   : > { %1126 = vmatprep.subr.bf16.mxu0 %v1096_v17  ;;  %1171 = vmatprep.subr.bf16.mxu1 %v2792_v1 }
 0x18b   : > { %v1094_v24 = vpack.c.bf16 %v2536_v7, %v2491_v2  ;;  %v980_v25 = vsel %vm977_vm7, %v2516_v18, %v2535_v19  ;;  %1127 = vmatpush1.bf16.msra.mxu0 %v1095_v14  ;;  %v981_v26 = vsel %vm977_vm7, %v2535_v19, %v2536_v7  ;;  %v933_v62 = vsel %vm3627_vm9, %v2545_v38, %v2546_v37 }
 0x18c   : > { %v1092_v28 = vpack.c.bf16 %v980_v25, %v978_v23  ;;  %v2539_v29 = vpop.permute.xlu0 %2538  ;;  %v2549_v30 = vpop.permute.xlu1 %2548  ;;  %v1093_v31 = vpack.c.bf16 %v981_v26, %v979_v22 }
 0x18d   : > { %v2541_v32 = vunpack.i.h.bf16 %v2539_v29  ;;  %v2540_v33 = vunpack.i.l.bf16 %v2539_v29  ;;  %v2551_v34 = vunpack.i.h.bf16 %v2549_v30  ;;  %v2550_v35 = vunpack.i.l.bf16 %v2549_v30  ;;  %1172 = vmatpush1.bf16.msra.mxu1 %v1094_v24 }
 0x18e   : > { %1128 = vmatprep.subr.bf16.mxu0 %v1093_v31  ;;  %1173 = vmatprep.subr.bf16.mxu1 %v2792_v1 }
 0x18f   : > { %v955_v40 = vsel %vm954_vm8, %v2540_v33, %v2525_v21  ;;  %v1091_v42 = vpack.c.bf16 %v2551_v34, %v2526_v20  ;;  %v957_v43 = vsel %vm954_vm8, %v2541_v32, %v2550_v35  ;;  %1129 = vmatpush1.bf16.msra.mxu0 %v1092_v28  ;;  %v958_v44 = vsel %vm954_vm8, %v2550_v35, %v2551_v34 }
 0x190   : > { %v1089_v45 = vpack.c.bf16 %v957_v43, %v955_v40  ;;  %v2559_v46 = vpop.permute.xlu0 %2558  ;;  %v2554_v48 = vpop.permute.xlu1 %2553  ;;  %v1090_v49 = vpack.c.bf16 %v958_v44, %v956_v39 }
 0x191   : > { %v2561_v50 = vunpack.i.h.bf16 %v2559_v46  ;;  %v2560_v51 = vunpack.i.l.bf16 %v2559_v46  ;;  %v2556_v52 = vunpack.i.h.bf16 %v2554_v48  ;;  %v2555_v53 = vunpack.i.l.bf16 %v2554_v48  ;;  %1174 = vmatpush1.bf16.msra.mxu1 %v1091_v42  ;;  %v2728_v42 = vld [vmem:[%s3656_s23] ss:$8 sps:$4 sm:$0xff]  }
 0x192   : > { %1130 = vmatprep.subr.bf16.mxu0 %v1090_v49  ;;  %1175 = vmatprep.subr.bf16.mxu1 %v2792_v1 }
 0x193   : > { %v1088_v63 = vpack.c.bf16 %v2561_v50, %v2546_v37  ;;  %v934_v2 = vsel %vm3627_vm9, %v2556_v52, %v2560_v51  ;;  %v932_v3 = vsel %vm3627_vm9, %v2555_v53, %v2545_v38  ;;  %1131 = vmatpush1.bf16.msra.mxu0 %v1089_v45  ;;  %v935_v4 = vsel %vm3627_vm9, %v2560_v51, %v2561_v50 }
 0x194   : > { %v1086_v5 = vpack.c.bf16 %v934_v2, %v932_v3  ;;  %v2564_v6 = vpop.permute.xlu0 %2563  ;;  %v2569_v9 = vpop.permute.xlu1 %2568  ;;  %v1087_v11 = vpack.c.bf16 %v935_v4, %v933_v62 }
 0x195   : > { %v2566_v13 = vunpack.i.h.bf16 %v2564_v6  ;;  %v2565_v14 = vunpack.i.l.bf16 %v2564_v6  ;;  %v2571_v15 = vunpack.i.h.bf16 %v2569_v9  ;;  %v2570_v16 = vunpack.i.l.bf16 %v2569_v9  ;;  %1176 = vmatpush1.bf16.msra.mxu1 %v1088_v63 }
 0x196   : > { %1132 = vmatprep.subr.bf16.mxu0 %v1087_v11  ;;  %1177 = vmatprep.subr.bf16.mxu1 %v2792_v1 }
 0x197   : > { %v1085_v17 = vpack.c.bf16 %v2571_v15, %v2566_v13  ;;  %1133 = vmatpush1.bf16.msra.mxu0 %v1086_v5  ;;  %v910_v18 = vsel %vm908_vm10, %v2565_v14, %v2566_v13  ;;  %v912_v7 = vsel %vm908_vm10, %v2570_v16, %v2571_v15 }
 0x198   : > { %v2574_v19 = vpop.permute.xlu0 %2573  ;;  %v2579_v20 = vpop.permute.xlu1 %2578  ;;  %v1084_v21 = vpack.c.bf16 %v912_v7, %v910_v18  ;;  %v1567_v18 = vld [vmem:[%s3590_s13] sm:$0xff] }
 0x199   : > { %v2576_v22 = vunpack.i.h.bf16 %v2574_v19  ;;  %v2575_v23 = vunpack.i.l.bf16 %v2574_v19  ;;  %1178 = vmatpush1.bf16.msra.mxu1 %v1085_v17  ;;  %v2581_v26 = vunpack.i.h.bf16 %v2579_v20  ;;  %v2580_v28 = vunpack.i.l.bf16 %v2579_v20  ;;  %v1558_v7 = vld [vmem:[%s3589_s12] sm:$0xff] }
 0x19a   : > { %1134 = vmatprep.subr.bf16.mxu0 %v1084_v21  ;;  %1179 = vmatprep.subr.bf16.mxu1 %v2792_v1 }
 0x19b   : > { %v909_v24 = vsel %vm908_vm10, %v2575_v23, %v2565_v14  ;;  %v911_v25 = vsel %vm908_vm10, %v2576_v22, %v2570_v16  ;;  %v1071_v38 = vsel %vm1069_vm11, %v2580_v28, %v2581_v26 }
 0x19c   : > { %v1083_v29 = vpack.c.bf16 %v911_v25, %v909_v24  ;;  %v2584_v30 = vpop.permute.xlu0 %2583  ;;  %v2589_v31 = vpop.permute.xlu1 %2588 }
 0x19d   : > { %v2586_v32 = vunpack.i.h.bf16 %v2584_v30  ;;  %v2585_v33 = vunpack.i.l.bf16 %v2584_v30  ;;  %v2591_v34 = vunpack.i.h.bf16 %v2589_v31  ;;  %v2590_v35 = vunpack.i.l.bf16 %v2589_v31  ;;  %1180 = vmatpush1.bf16.msra.mxu1 %v1082_v59 }
 0x19e   : > { %1135 = vmatpush1.bf16.msra.mxu0 %v1083_v29  ;;  %1195 = vmatprep.subr.bf16.mxu1 %v2792_v1 }
 0x19f   : > { %v1106_v37 = vpack.c.bf16 %v2586_v32, %v2581_v26  ;;  %1136 = vmatprep.subr.bf16.mxu0 %v1081_v60  ;;  %v1073_v39 = vsel %vm1069_vm11, %v2585_v33, %v2586_v32  ;;  %v1072_v41 = vsel %vm1069_vm11, %v2591_v34, %v2585_v33  ;;  %v1070_v56 = vsel %vm1069_vm11, %v2590_v35, %v2580_v28 }
 0x1a0   : > { %v1105_v40 = vpack.c.bf16 %v1073_v39, %v1071_v38  ;;  %v1104_v47 = vpack.c.bf16 %v1072_v41, %v1070_v56 }
 0x1a1   : > { %1196 = vmatpush2.bf16.msra.mxu1 %v1106_v37 }
 0x1a2   : > { %1137 = vmatpush1.bf16.msra.mxu0 %v1080_v61  ;;  %2351 = vmatprep.subr.bf16.mxu1 %v2791_v0 }
 0x1a3   : > { %1152 = vmatprep.subr.bf16.mxu0 %v1105_v40 }
 0x1a4   : > { %1198 = vmatmul.mubr.bf16.vlgmr.msra.gmra.mxu1 %v2728_v42 }
 0x1a5   : > { %2352 = vmatpush3.bf16.msra.mxu1 %v3001_v10  ;;  %2353 = vmatprep.mubr.msk.bf16.mxu1 %vm2793_vm0, %v2791_v0 }
 0x1a6   : > { %1153 = vmatpush2.bf16.msra.mxu0 %v1104_v47  ;;  %2357 = vmatprep.subr.bf16.mxu1 %v2791_v0 }
 0x1a7   : > { %2278 = vmatprep.subr.msk.bf16.mxu0 %vm732_vm1, %v2998_v8 }
 0x1a9   : > { %1155 = vmatmul.mubr.bf16.vlgmr.msra.gmra.mxu0 %v2728_v42  ;;  %v1337_v60 = vpop.permute.xlu0 %1336  ;;  %v1346_v45 = vpop.permute.xlu1 %1345 }
 0x1aa   : > { %1267 = vmatpush1.bf16.msra.mxu0 %v3009_v12  ;;  %1284 = vmatprep.mubr.bf16.mxu0 %v2792_v1 }
 0x1ac   : > { %2354 = vmatmul.mubr.msk.bf16.vlgmr.msra.gmra.mxu1 %vm728_vm2, %v1248_v55 }
 0x1ad   : > { %2367 = vmatprep.mubr.msk.bf16.mxu1 %vm2793_vm0, %v2791_v0 }
 0x1b1   : > { %2279 = vmatmul.mubr.msk.bf16.vlgmr.msra.gmra.mxu0 %vm728_vm2, %v1248_v55  ;;  %vm2803_vm2 = vmmov 1  }
 0x1b2   : > { %1509 = vmatprep.mubr.bf16.mxu0 %v2792_v1  ;;  %vm3346_vm3 = vmpackc.low %vm2803_vm2, %vm1606_vm14 }
 0x264   : > { %v3161_v10 = vpop.f32.mrf.mxu1 }
 0x266   : > { %v1201_v8 = vpop.f32.mrf.mxu1 }
 0x268   : > { %v3163_v57 = vpop.f32.mrf.mxu1 }
 0x269   : > { %v3165_v58 = vpop.f32.mrf.mxu0 }
 0x26a   : > { %v1204_v59 = vpop.f32.mrf.mxu1 }
 0x26b   : > { %v3167_v12 = vpop.f32.mrf.mxu0 }
 0x26c   : > { %v1327_v61 = vpop.f32.mrf.mxu1 }
 0x26d   : > { %v1341_v43 = vmul.f32 %v1337_v60, %v1327_v61  ;;  %v3169_v44 = vpop.f32.mrf.mxu0 }
 0x26e   : > { %v2355_v46 = vpop.f32.mrf.mxu1 }
 0x26f   : > { %v1350_v48 = vadd.f32 %v1346_v45, %v1341_v43  ;;  %v3171_v49 = vpop.f32.mrf.mxu0 }
 0x270   : > { %v1330_v50 = vpop.f32.mrf.mxu1 }
 0x271   : > { %v1353_v51 = vmax.f32 %v1350_v48, 0.0  ;;  %v1286_v52 = vpop.f32.mrf.mxu0 }
 0x272   : > { %v1339_v53 = vmul.f32 %v1337_v60, %v1286_v52  ;;  %v2356_v62 = vpop.f32.mrf.mxu1 }
 0x273   : > { %v3174_v63 = vmul.f32 %v1353_v51, %v3019_v27  ;;  %v1288_v2 = vpop.f32.mrf.mxu0 }
 0x274   : > { %v1348_v3 = vadd.f32 %v1346_v45, %v1339_v53  ;;  %v1340_v4 = vmul.f32 %v1337_v60, %v1288_v2 }
 0x275   : > { %1441 = vrot.lane.b32.xlu1 %v3174_v63, %s3621_s4  ;;  %v1290_v5 = vpop.f32.mrf.mxu0 }
 0x276   : > { %v1351_v6 = vmax.f32 %v1348_v3, 0.0  ;;  %v1349_v9 = vadd.f32 %v1346_v45, %v1340_v4 }
 0x277   : > { %v1291_v11 = vpop.f32.mrf.mxu0 }
 0x278   : > { %v3179_v13 = vmul.f32 %v1351_v6, %v3031_v54  ;;  %v1352_v14 = vmax.f32 %v1349_v9, 0.0 }
 0x27a   : > { %1426 = vrot.lane.b32.xlu1 %v3179_v13, %s3623_s7  ;;  %1415 = vrot.lane.b32.xlu0 %v3179_v13, %s2794_s25  ;;  %v3186_v15 = vmul.f32 %v1352_v14, %v3021_v36 }
 0x27c   : > { %v2602_v16 = vpack.i.bf16 %v3174_v63, %v3186_v15  ;;  %v2592_v17 = vpack.i.bf16 %v3186_v15, %v3179_v13 }
 0x27e   : > { %1404 = vrot.lane.b32.xlu1 %v3179_v13, %s3625_s6  ;;  %1393 = vrot.lane.b32.xlu0 %v3179_v13, %s3660_s1 }
 0x282   : > { %1371 = vrot.lane.b32.xlu0 %v3179_v13, %s3661_s24  ;;  %2603 = vrot.lane.b32.xlu1 %v2602_v16, %s3623_s7 }
 0x286   : > { %2613 = vrot.lane.b32.xlu1 %v2602_v16, %s3625_s6  ;;  %2593 = vrot.lane.b32.xlu0 %v2592_v17, %s3621_s4  ;;  %s2415_s4 = smul.u32 1536, %s2948_s5 }
 0x288   : > { %s3532_s5 = scalar_lea.hbm %s3675_s0, %s2415_s4 }
 0x28a   : > { %2623 = vrot.lane.b32.xlu1 %v2602_v16, %s3662_s2  ;;  %2598 = vrot.lane.b32.xlu0 %v2602_v16, %s2794_s25 }
 0x28e   : > { %1382 = vrot.lane.b32.xlu1 %v3179_v13, %s3662_s2  ;;  %2608 = vrot.lane.b32.xlu0 %v2602_v16, %s3660_s1 }
 0x292   : > { %1360 = vrot.lane.b32.xlu1 %v3179_v13, %s2800_s26  ;;  %2618 = vrot.lane.b32.xlu0 %v2602_v16, %s3661_s24 }
 0x296   : > { %1570 = vperm.xlu1 %2471, %v1567_v18   ;;  %2628 = vrot.lane.b32.xlu0 %v2602_v16, %s2800_s26 }
 0x29a   : > { %1561 = vperm.xlu0 %2470, %v1558_v7   ;;  %1580 = vrot.lane.b32.xlu1 %v3019_v27, %s3660_s1 }
 0x29e   : > { %1578 = vrot.lane.b32.xlu0 %v3021_v36, %s3660_s1 }
 0x2a2   : > { %1576 = vrot.lane.b32.xlu0 %v3031_v54, %s3660_s1 }
 0x2e7   : > { %v1442_v19 = vpop.permute.xlu1 %1441 }
 0x2e8   : > { %v1462_v20 = vpack.c.bf16 %v1442_v19, %v1442_v19 }
 0x2ea   : > { %v1475_v21 = vsel %vm732_vm1, %v1462_v20, 0 }
 0x2eb   : > { %2358 = vmatpush3.bf16.msra.mxu1 %v1475_v21 }
 0x2ec   : > { %v1427_v22 = vpop.permute.xlu1 %1426  ;;  %v1416_v23 = vpop.permute.xlu0 %1415  ;;  %2359 = vmatprep.subr.bf16.mxu1 %v2791_v0 }
 0x2f0   : > { %v1405_v24 = vpop.permute.xlu1 %1404  ;;  %v1394_v25 = vpop.permute.xlu0 %1393 }
 0x2f4   : > { %v1372_v26 = vpop.permute.xlu0 %1371  ;;  %v2604_v28 = vpop.permute.xlu1 %2603 }
 0x2f5   : > { %v2606_v31 = vunpack.i.h.bf16 %v2604_v28  ;;  %v2605_v32 = vunpack.i.l.bf16 %v2604_v28 }
 0x2f7   : > { %v1432_v40 = vsel %vm1046_vm4, %v1427_v22, %v2605_v32  ;;  %v1433_v47 = vsel %vm1046_vm4, %v2605_v32, %v2606_v31 }
 0x2f8   : > { %v2614_v27 = vpop.permute.xlu1 %2613  ;;  %v2594_v29 = vpop.permute.xlu0 %2593 }
 0x2f9   : > { %v2596_v30 = vunpack.i.h.bf16 %v2594_v29  ;;  %v2595_v36 = vunpack.i.l.bf16 %v2594_v29  ;;  %v2615_v42 = vunpack.i.l.bf16 %v2614_v27  ;;  %v2616_v55 = vunpack.i.h.bf16 %v2614_v27 }
 0x2fb   : > { %v1444_v54 = vsel %vm1069_vm11, %v2596_v30, %v1442_v19  ;;  %v1443_v33 = vsel %vm1069_vm11, %v2595_v36, %v2596_v30  ;;  %v1410_v50 = vsel %vm1000_vm6, %v1405_v24, %v2615_v42  ;;  %v1411_v3 = vsel %vm1000_vm6, %v2615_v42, %v2616_v55  ;;  %v1463_v36 = vld [vmem:[%s3588_s11] sm:$0xf] }
 0x2fc   : > { %v1461_v34 = vpack.c.bf16 %v1444_v54, %v1444_v54  ;;  %v2599_v35 = vpop.permute.xlu0 %2598  ;;  %v1460_v37 = vpack.c.bf16 %v1443_v33, %v1443_v33  ;;  %v2624_v41 = vpop.permute.xlu1 %2623 }
 0x2fd   : > { %v2601_v38 = vunpack.i.h.bf16 %v2599_v35  ;;  %v2600_v39 = vunpack.i.l.bf16 %v2599_v35  ;;  %v2626_v51 = vunpack.i.h.bf16 %v2624_v41  ;;  %v2625_v52 = vunpack.i.l.bf16 %v2624_v41 }
 0x2fe   : > { %2281 = vmatprep.subr.msk.bf16.mxu0 %vm732_vm1, %v1461_v34  ;;  %v1469_v56 = vsel %vm732_vm1, %v1460_v37, 0 }
 0x2ff   : > { %v1459_v8 = vpack.c.bf16 %v2606_v31, %v2601_v38  ;;  %v1421_v59 = vsel %vm1023_vm5, %v1416_v23, %v2600_v39  ;;  %1484 = vmatpush1.bf16.msra.mxu0 %v1469_v56  ;;  %v1422_v60 = vsel %vm1023_vm5, %v2600_v39, %v2601_v38  ;;  %v1389_v16 = vsel %vm954_vm8, %v2625_v52, %v2626_v51 }
 0x300   : > { %v1457_v61 = vpack.c.bf16 %v1432_v40, %v1421_v59  ;;  %v2609_v43 = vpop.permute.xlu0 %2608  ;;  %v1458_v45 = vpack.c.bf16 %v1433_v47, %v1422_v60  ;;  %v1383_v4 = vpop.permute.xlu1 %1382 }
 0x301   : > { %v2611_v46 = vunpack.i.h.bf16 %v2609_v43  ;;  %v2610_v48 = vunpack.i.l.bf16 %v2609_v43  ;;  %2360 = vmatpush3.bf16.msra.mxu1 %v1459_v8  ;;  %v1388_v17 = vsel %vm954_vm8, %v1383_v4, %v2625_v52 }
 0x302   : > { %1485 = vmatprep.subr.bf16.mxu0 %v1458_v45  ;;  %2361 = vmatprep.subr.bf16.mxu1 %v2791_v0 }
 0x303   : > { %v1456_v53 = vpack.c.bf16 %v2616_v55, %v2611_v46  ;;  %v1399_v62 = vsel %vm977_vm7, %v1394_v25, %v2610_v48  ;;  %1486 = vmatpush1.bf16.msra.mxu0 %v1457_v61  ;;  %v1400_v2 = vsel %vm977_vm7, %v2610_v48, %v2611_v46 }
 0x304   : > { %v1454_v5 = vpack.c.bf16 %v1410_v50, %v1399_v62  ;;  %v2619_v6 = vpop.permute.xlu0 %2618  ;;  %v1455_v9 = vpack.c.bf16 %v1411_v3, %v1400_v2  ;;  %v1361_v25 = vpop.permute.xlu1 %1360 }
 0x305   : > { %v2621_v11 = vunpack.i.h.bf16 %v2619_v6  ;;  %v2620_v14 = vunpack.i.l.bf16 %v2619_v6  ;;  %2362 = vmatpush3.bf16.msra.mxu1 %v1456_v53  ;;  %v1922_v6 = vld [vmem:[%s3596_s19] sm:$0xff] }
 0x306   : > { %1487 = vmatprep.subr.bf16.mxu0 %v1455_v9  ;;  %2363 = vmatprep.subr.bf16.mxu1 %v2791_v0  ;;  %v1913_v9 = vld [vmem:[%s3595_s18] sm:$0xff] }
 0x307   : > { %v1453_v18 = vpack.c.bf16 %v2626_v51, %v2621_v11  ;;  %v1377_v7 = vsel %vm3627_vm9, %v1372_v26, %v2620_v14  ;;  %1488 = vmatpush1.bf16.msra.mxu0 %v1454_v5  ;;  %v1378_v19 = vsel %vm3627_vm9, %v2620_v14, %v2621_v11 }
 0x308   : > { %v1451_v20 = vpack.c.bf16 %v1388_v17, %v1377_v7  ;;  %v2629_v21 = vpop.permute.xlu0 %2628  ;;  %v1452_v22 = vpack.c.bf16 %v1389_v16, %v1378_v19 }
 0x309   : > { %v2631_v23 = vunpack.i.h.bf16 %v2629_v21  ;;  %v2630_v24 = vunpack.i.l.bf16 %v2629_v21  ;;  %2364 = vmatpush3.bf16.msra.mxu1 %v1453_v18 }
 0x30a   : > { %1489 = vmatprep.subr.bf16.mxu0 %v1452_v22  ;;  %2365 = vmatprep.subr.bf16.mxu1 %v2791_v0 }
 0x30b   : > { %v1450_v28 = vpack.c.bf16 %v2631_v23, %v3174_v63  ;;  %v1366_v27 = vsel %vm908_vm10, %v1361_v25, %v2630_v24  ;;  %1490 = vmatpush1.bf16.msra.mxu0 %v1451_v20  ;;  %v1367_v26 = vsel %vm908_vm10, %v2630_v24, %v2631_v23 }
 0x30c   : > { %v1448_v29 = vpack.c.bf16 %v1366_v27, %v3179_v13  ;;  %v1449_v30 = vpack.c.bf16 %v1367_v26, %v3186_v15 }
 0x30d   : > { %2366 = vmatpush3.bf16.msra.mxu1 %v1450_v28 }
 0x30e   : > { %1491 = vmatprep.subr.bf16.mxu0 %v1449_v30  ;;  %2371 = vmatprep.subr.bf16.mxu1 %v2791_v0 }
 0x30f   : > { %1492 = vmatpush1.bf16.msra.mxu0 %v1448_v29 }
 0x310   : > { %2368 = vmatmul.mubr.msk.bf16.vlgmr.msra.gmra.mxu1 %vm1464_vm12, %v1463_v36 }
 0x311   : > { %2381 = vmatprep.mubr.msk.bf16.mxu1 %vm2793_vm0, %v2791_v0  ;;  %v1571_v31 = vpop.permute.xlu1 %1570 }
 0x312   : > { %2282 = vmatmul.mubr.msk.bf16.vlgmr.msra.gmra.mxu0 %vm1464_vm12, %v1463_v36 }
 0x313   : > { %1758 = vmatprep.mubr.bf16.mxu0 %v2792_v1 }
 0x315   : > { %v1562_v63 = vpop.permute.xlu0 %1561  ;;  %v3257_v40 = vpop.permute.xlu1 %1580 }
 0x319   : > { %v1579_v13 = vpop.permute.xlu0 %1578 }
 0x31a   : > { %v3265_v60 = vsel %vm977_vm7, %v1579_v13, %v3257_v40 }
 0x31d   : > { %v1577_v34 = vpop.permute.xlu0 %1576 }
 0x31e   : > { %v3260_v56 = vsel %vm977_vm7, %v1577_v34, %v1579_v13 }
 0x3d0   : > { %v1552_v15 = vpop.f32.mrf.mxu1 }
 0x3d1   : > { %v1566_v32 = vmul.f32 %v1562_v63, %v1552_v15 }
 0x3d2   : > { %v1511_v54 = vpop.f32.mrf.mxu0  ;;  %v2369_v33 = vpop.f32.mrf.mxu1 }
 0x3d3   : > { %v1564_v35 = vmul.f32 %v1562_v63, %v1511_v54  ;;  %v1575_v39 = vadd.f32 %v1571_v31, %v1566_v32 }
 0x3d4   : > { %v1513_v37 = vpop.f32.mrf.mxu0  ;;  %v1555_v38 = vpop.f32.mrf.mxu1 }
 0x3d5   : > { %v1573_v42 = vadd.f32 %v1571_v31, %v1564_v35  ;;  %v1565_v41 = vmul.f32 %v1562_v63, %v1513_v37  ;;  %v1589_v43 = vmul.f32 %v3257_v40, %v1575_v39 }
 0x3d6   : > { %v1515_v47 = vpop.f32.mrf.mxu0  ;;  %v2370_v55 = vpop.f32.mrf.mxu1 }
 0x3d7   : > { %v1574_v8 = vadd.f32 %v1571_v31, %v1565_v41  ;;  %v1587_v59 = vmul.f32 %v3260_v56, %v1573_v42 }
 0x3d8   : > { %v1516_v61 = vpop.f32.mrf.mxu0 }
 0x3d9   : > { %v1588_v45 = vmul.f32 %v3265_v60, %v1574_v8  ;;  %1593 = vrot.lane.b32.xlu0 %v1587_v59, %s2802_s3 }
 0x3db   : > { %v2632_v46 = vpack.i.bf16 %v1589_v43, %v1588_v45 }
 0x3dd   : > { %2633 = vrot.lane.b32.xlu1 %v2632_v46, %s2802_s3 }
 0x44b   : > { %v3271_v48 = vpop.permute.xlu0 %1593 }
 0x44c   : > { %v1605_v50 = vsel %vm1599_vm13, 0.0, %v3271_v48 }
 0x44d   : > { %1676 = vrot.lane.b32.xlu0 %v1605_v50, %s3623_s7  ;;  %1665 = vrot.lane.b32.xlu1 %v1605_v50, %s2794_s25 }
 0x44f   : > { %v2634_v51 = vpop.permute.xlu1 %2633 }
 0x450   : > { %v2636_v52 = vunpack.i.h.bf16 %v2634_v51  ;;  %v2635_v53 = vunpack.i.l.bf16 %v2634_v51 }
 0x451   : > { %1654 = vrot.lane.b32.xlu0 %v1605_v50, %s3625_s6  ;;  %1643 = vrot.lane.b32.xlu1 %v1605_v50, %s3660_s1 }
 0x452   : > { %v3280_v62 = vsel %vm1599_vm13, %v2635_v53, %v2636_v52  ;;  %v3286_v3 = vsel %vm1599_vm13, %v3271_v48, %v2635_v53 }
 0x453   : > { %v1607_v2 = vsel %vm1606_vm14, %v3280_v62, 0.0  ;;  %v2637_v5 = vpack.i.bf16 %v3286_v3, %v1605_v50 }
 0x454   : > { %v2647_v4 = vpack.i.bf16 %v1607_v2, %v3286_v3 }
 0x455   : > { %1621 = vrot.lane.b32.xlu1 %v1605_v50, %s3661_s24  ;;  %1691 = vrot.lane.b32.xlu0 %v1607_v2, %s3663_s28 }
 0x459   : > { %2648 = vrot.lane.b32.xlu0 %v2647_v4, %s3623_s7  ;;  %2638 = vrot.lane.b32.xlu1 %v2637_v5, %s3663_s28  ;;  %s3668_s7 = smov 91  }
 0x45d   : > { %2658 = vrot.lane.b32.xlu0 %v2647_v4, %s3625_s6  ;;  %2643 = vrot.lane.b32.xlu1 %v2647_v4, %s2794_s25  ;;  %s3669_s6 = smov 108  }
 0x461   : > { %2668 = vrot.lane.b32.xlu0 %v2647_v4, %s3662_s2  ;;  %2653 = vrot.lane.b32.xlu1 %v2647_v4, %s3660_s1 }
 0x465   : > { %1632 = vrot.lane.b32.xlu0 %v1605_v50, %s3662_s2  ;;  %2663 = vrot.lane.b32.xlu1 %v2647_v4, %s3661_s24 }
 0x469   : > { %1610 = vrot.lane.b32.xlu0 %v1605_v50, %s2800_s26  ;;  %2673 = vrot.lane.b32.xlu1 %v2647_v4, %s2800_s26 }
 0x46d   : > { %1925 = vperm.xlu0 %2470, %v1922_v6   ;;  %1916 = vperm.xlu1 %2471, %v1913_v9  }
 0x4bf   : > { %v1677_v11 = vpop.permute.xlu0 %1676  ;;  %v1666_v14 = vpop.permute.xlu1 %1665 }
 0x4c3   : > { %v1655_v16 = vpop.permute.xlu0 %1654  ;;  %v1644_v17 = vpop.permute.xlu1 %1643 }
 0x4c7   : > { %v1622_v18 = vpop.permute.xlu1 %1621  ;;  %v1692_v7 = vpop.permute.xlu0 %1691 }
 0x4c8   : > { %v1712_v19 = vpack.c.bf16 %v1692_v7, %v1692_v7 }
 0x4ca   : > { %v3309_v20 = vsel %vm732_vm1, %v1712_v19, 0 }
 0x4cb   : > { %2372 = vmatpush3.bf16.msra.mxu1 %v3309_v20  ;;  %v2649_v21 = vpop.permute.xlu0 %2648  ;;  %v2639_v22 = vpop.permute.xlu1 %2638 }
 0x4cc   : > { %v2641_v23 = vunpack.i.h.bf16 %v2639_v22  ;;  %v2640_v24 = vunpack.i.l.bf16 %v2639_v22  ;;  %2373 = vmatprep.subr.bf16.mxu1 %v2791_v0  ;;  %v2651_v25 = vunpack.i.h.bf16 %v2649_v21  ;;  %v2650_v28 = vunpack.i.l.bf16 %v2649_v21 }
 0x4ce   : > { %v1694_v27 = vsel %vm1069_vm11, %v2641_v23, %v1692_v7  ;;  %v1693_v26 = vsel %vm1069_vm11, %v2640_v24, %v2641_v23  ;;  %v1682_v31 = vsel %vm1046_vm4, %v1677_v11, %v2650_v28  ;;  %v1683_v33 = vsel %vm1046_vm4, %v2650_v28, %v2651_v25 }
 0x4cf   : > { %v3315_v29 = vpack.c.bf16 %v1694_v27, %v1694_v27  ;;  %v2659_v30 = vpop.permute.xlu0 %2658  ;;  %v2644_v36 = vpop.permute.xlu1 %2643  ;;  %v1710_v63 = vpack.c.bf16 %v1693_v26, %v1693_v26 }
 0x4d0   : > { %v2646_v13 = vunpack.i.h.bf16 %v2644_v36  ;;  %v2645_v15 = vunpack.i.l.bf16 %v2644_v36  ;;  %v2660_v32 = vunpack.i.l.bf16 %v2659_v30  ;;  %v2661_v34 = vunpack.i.h.bf16 %v2659_v30 }
 0x4d1   : > { %2284 = vmatprep.subr.msk.bf16.mxu0 %vm732_vm1, %v3315_v29  ;;  %v3321_v54 = vsel %vm732_vm1, %v1710_v63, 0 }
 0x4d2   : > { %v3324_v35 = vpack.c.bf16 %v2651_v25, %v2646_v13  ;;  %v1671_v37 = vsel %vm1023_vm5, %v1666_v14, %v2645_v15  ;;  %1733 = vmatpush1.bf16.msra.mxu0 %v3321_v54  ;;  %v1672_v38 = vsel %vm1023_vm5, %v2645_v15, %v2646_v13  ;;  %v1660_v59 = vsel %vm1000_vm6, %v1655_v16, %v2660_v32 }
 0x4d3   : > { %v3329_v39 = vpack.c.bf16 %v1682_v31, %v1671_v37  ;;  %v2669_v42 = vpop.permute.xlu0 %2668  ;;  %v2654_v41 = vpop.permute.xlu1 %2653  ;;  %v1708_v47 = vpack.c.bf16 %v1683_v33, %v1672_v38  ;;  %v1661_v51 = vsel %vm1000_vm6, %v2660_v32, %v2661_v34 }
 0x4d4   : > { %v2656_v55 = vunpack.i.h.bf16 %v2654_v41  ;;  %v2655_v8 = vunpack.i.l.bf16 %v2654_v41  ;;  %2374 = vmatpush3.bf16.msra.mxu1 %v3324_v35  ;;  %v2671_v61 = vunpack.i.h.bf16 %v2669_v42  ;;  %v2670_v43 = vunpack.i.l.bf16 %v2669_v42 }
 0x4d5   : > { %1734 = vmatprep.subr.bf16.mxu0 %v1708_v47  ;;  %2375 = vmatprep.subr.bf16.mxu1 %v2791_v0 }
 0x4d6   : > { %v1706_v45 = vpack.c.bf16 %v2661_v34, %v2656_v55  ;;  %v1649_v46 = vsel %vm977_vm7, %v1644_v17, %v2655_v8  ;;  %1735 = vmatpush1.bf16.msra.mxu0 %v3329_v39  ;;  %v1650_v50 = vsel %vm977_vm7, %v2655_v8, %v2656_v55  ;;  %v1639_v9 = vsel %vm954_vm8, %v2670_v43, %v2671_v61 }
 0x4d7   : > { %v1704_v52 = vpack.c.bf16 %v1660_v59, %v1649_v46  ;;  %v1633_v53 = vpop.permute.xlu0 %1632  ;;  %v2664_v2 = vpop.permute.xlu1 %2663  ;;  %v1705_v4 = vpack.c.bf16 %v1661_v51, %v1650_v50 }
 0x4d8   : > { %v2666_v5 = vunpack.i.h.bf16 %v2664_v2  ;;  %v2665_v6 = vunpack.i.l.bf16 %v2664_v2  ;;  %2376 = vmatpush3.bf16.msra.mxu1 %v1706_v45  ;;  %v1638_v11 = vsel %vm954_vm8, %v1633_v53, %v2670_v43 }
 0x4d9   : > { %1736 = vmatprep.subr.bf16.mxu0 %v1705_v4  ;;  %2377 = vmatprep.subr.bf16.mxu1 %v2791_v0 }
 0x4da   : > { %v1703_v14 = vpack.c.bf16 %v2671_v61, %v2666_v5  ;;  %v1627_v16 = vsel %vm3627_vm9, %v1622_v18, %v2665_v6  ;;  %1737 = vmatpush1.bf16.msra.mxu0 %v1704_v52  ;;  %v1628_v17 = vsel %vm3627_vm9, %v2665_v6, %v2666_v5  ;;  %vm3355_vm9 = vmpackc.low %vm2803_vm2, %vm2285_vm15 }
 0x4db   : > { %v1701_v7 = vpack.c.bf16 %v1638_v11, %v1627_v16  ;;  %v2674_v19 = vpop.permute.xlu1 %2673  ;;  %v1702_v21 = vpack.c.bf16 %v1639_v9, %v1628_v17  ;;  %v1611_v24 = vpop.permute.xlu0 %1610  ;;  %v1207_v17 = vld [vmem:[%s3670_s29 + $0x8] sm:$0xff] }
 0x4dc   : > { %v2676_v22 = vunpack.i.h.bf16 %v2674_v19  ;;  %v2675_v23 = vunpack.i.l.bf16 %v2674_v19  ;;  %2378 = vmatpush3.bf16.msra.mxu1 %v1703_v14  ;;  %v2152_v19 = vld [vmem:[%s3598_s21] sm:$0xff] }
 0x4dd   : > { %1738 = vmatprep.subr.bf16.mxu0 %v1702_v21  ;;  %2379 = vmatprep.subr.bf16.mxu1 %v2791_v0 }
 0x4de   : > { %v2291_v18 = vpack.c.bf16 %v2676_v22, %v3280_v62  ;;  %v1616_v28 = vsel %vm908_vm10, %v1611_v24, %v2675_v23  ;;  %1739 = vmatpush1.bf16.msra.mxu0 %v1701_v7  ;;  %v1617_v27 = vsel %vm908_vm10, %v2675_v23, %v2676_v22  ;;  %v1713_v62 = vld [vmem:[%s3591_s14] sm:$0xf] }
 0x4df   : > { %v2287_v26 = vpack.c.bf16 %v1616_v28, %v3271_v48  ;;  %v1699_v30 = vpack.c.bf16 %v1617_v27, %v3286_v3  ;;  %v1828_v48 = vld [vmem:[%s3594_s17] sm:$0xf] }
 0x4e0   : > { %2380 = vmatpush3.bf16.msk.msra.mxu1 %vm3346_vm3, %v2291_v18  ;;  %v2161_v24 = vld [vmem:[%s3599_s22] sm:$0xff] }
 0x4e1   : > { %1740 = vmatprep.subr.bf16.mxu0 %v1699_v30  ;;  %2385 = vmatprep.subr.bf16.mxu1 %v2791_v0 }
 0x4e2   : > { %2288 = vmatpush1.bf16.msk.msra.mxu0 %vm3355_vm9, %v2287_v26 }
 0x4e3   : > { %2294 = vmatprep.subr.msk.bf16.mxu0 %vm732_vm1, %v3315_v29  ;;  %2382 = vmatmul.mubr.msk.bf16.vlgmr.msra.gmra.mxu1 %vm1464_vm12, %v1713_v62 }
 0x4e4   : > { %2386 = vmatpush3.bf16.msra.mxu1 %v3309_v20  ;;  %2395 = vmatprep.mubr.msk.bf16.mxu1 %vm2793_vm0, %v2791_v0 }
 0x4e5   : > { %2289 = vmatmul.mubr.msk.bf16.vlgmr.msra.gmra.mxu0 %vm1464_vm12, %v1713_v62  ;;  %2387 = vmatprep.subr.bf16.mxu1 %v2791_v0 }
 0x4e6   : > { %1839 = vmatpush1.bf16.msra.mxu0 %v3321_v54  ;;  %1864 = vmatprep.mubr.bf16.mxu0 %v2792_v1 }
 0x4e7   : > { %1840 = vmatprep.subr.bf16.mxu0 %v1708_v47 }
 0x4e8   : > { %2388 = vmatpush3.bf16.msra.mxu1 %v3324_v35  ;;  %v1917_v54 = vpop.permute.xlu1 %1916  ;;  %v1926_v34 = vpop.permute.xlu0 %1925 }
 0x4e9   : > { %2389 = vmatprep.subr.bf16.mxu1 %v2791_v0 }
 0x4ea   : > { %1841 = vmatpush1.bf16.msra.mxu0 %v3329_v39 }
 0x4eb   : > { %1842 = vmatprep.subr.bf16.mxu0 %v1705_v4 }
 0x4ec   : > { %2390 = vmatpush3.bf16.msra.mxu1 %v1706_v45 }
 0x4ed   : > { %2391 = vmatprep.subr.bf16.mxu1 %v2791_v0 }
 0x4ee   : > { %1843 = vmatpush1.bf16.msra.mxu0 %v1704_v52 }
 0x4ef   : > { %1844 = vmatprep.subr.bf16.mxu0 %v1702_v21  ;;  %v1807_v21 = vld [vmem:[%s3592_s15] sm:$0xff] }
 0x4f0   : > { %2392 = vmatpush3.bf16.msra.mxu1 %v1703_v14 }
 0x4f1   : > { %2393 = vmatprep.subr.bf16.mxu1 %v2791_v0 }
 0x4f2   : > { %1845 = vmatpush1.bf16.msra.mxu0 %v1701_v7  ;;  %v1206_v7 = vld [vmem:[%s3670_s29] sm:$0xff] }
 0x4f3   : > { %1846 = vmatprep.subr.bf16.mxu0 %v1699_v30 }
 0x4f4   : > { %2394 = vmatpush3.bf16.msk.msra.mxu1 %vm3346_vm3, %v2291_v18  ;;  %v1816_v18 = vld [vmem:[%s3593_s16] sm:$0xff] }
 0x4f5   : > { %2399 = vmatprep.subr.bf16.mxu1 %v2791_v0 }
 0x4f6   : > { %2298 = vmatpush1.bf16.msk.msra.mxu0 %vm3355_vm9, %v2287_v26 }
 0x4f7   : > { %2396 = vmatmul.mubr.msk.bf16.vlgmr.msra.gmra.mxu1 %vm1464_vm12, %v1828_v48 }
 0x4f8   : > { %2409 = vmatprep.mubr.msk.bf16.mxu1 %vm2793_vm0, %v2791_v0  ;;  %vm3672_vm0 = vcmask 1031168  }
 0x4f9   : > { %2299 = vmatmul.mubr.msk.bf16.vlgmr.msra.gmra.mxu0 %vm1464_vm12, %v1828_v48 }
 0x4fa   : > { %2103 = vmatprep.mubr.bf16.mxu0 %v2792_v1 }
 0x5a3   : > { %v3395_v3 = vpop.f32.mrf.mxu1 }
 0x5a5   : > { %v3397_v20 = vpop.f32.mrf.mxu0  ;;  %v2383_v29 = vpop.f32.mrf.mxu1 }
 0x5a7   : > { %v3399_v63 = vpop.f32.mrf.mxu0  ;;  %v1804_v13 = vpop.f32.mrf.mxu1 }
 0x5a9   : > { %v1764_v15 = vpop.f32.mrf.mxu0  ;;  %v2384_v31 = vpop.f32.mrf.mxu1 }
 0x5ab   : > { %v1765_v32 = vpop.f32.mrf.mxu0 }
 0x5b7   : > { %v1907_v33 = vpop.f32.mrf.mxu1 }
 0x5b8   : > { %v1921_v35 = vmul.f32 %v1917_v54, %v1907_v33 }
 0x5b9   : > { %v1866_v37 = vpop.f32.mrf.mxu0  ;;  %v2397_v38 = vpop.f32.mrf.mxu1 }
 0x5ba   : > { %v1930_v39 = vadd.f32 %v1926_v34, %v1921_v35  ;;  %v1919_v42 = vmul.f32 %v1917_v54, %v1866_v37 }
 0x5bb   : > { %v1868_v1 = vpop.f32.mrf.mxu0  ;;  %v1910_v41 = vpop.f32.mrf.mxu1 }
 0x5bc   : > { %v1928_v47 = vadd.f32 %v1926_v34, %v1919_v42  ;;  %v1920_v55 = vmul.f32 %v1917_v54, %v1868_v1  ;;  %v1933_v61 = vmax.f32 %v1930_v39, 0.0 }
 0x5bd   : > { %v1870_v8 = vpop.f32.mrf.mxu0  ;;  %v2398_v59 = vpop.f32.mrf.mxu1 }
 0x5be   : > { %v1931_v43 = vmax.f32 %v1928_v47, 0.0  ;;  %v1929_v45 = vadd.f32 %v1926_v34, %v1920_v55  ;;  %v1936_v52 = vmul.f32 %v1933_v61, %v3257_v40 }
 0x5bf   : > { %v1871_v46 = vpop.f32.mrf.mxu0 }
 0x5c0   : > { %v1932_v50 = vmax.f32 %v1929_v45, 0.0  ;;  %v1934_v51 = vmul.f32 %v1931_v43, %v3260_v56 }
 0x5c2   : > { %v1935_v53 = vmul.f32 %v1932_v50, %v3265_v60  ;;  %1940 = vrot.lane.b32.xlu0 %v1934_v51, %s2802_s3 }
 0x5c4   : > { %v2677_v2 = vpack.i.bf16 %v1936_v52, %v1935_v53 }
 0x5c6   : > { %2678 = vrot.lane.b32.xlu1 %v2677_v2, %s2802_s3  ;;  %s3671_s3 = sld [smem:[#allocation19_spill]] }
 0x5cc   : > { %v1225_v22 = vld [vmem:[%s3671_s3 + $0x8] sm:$0xff]  ;;  %v1224_v23 = vld [vmem:[%s3671_s3] sm:$0xff]  ;;  %s2804_s3 = smov [#allocation2]  }
 0x5cd   : > { %s2733_s8 = sshll.u32 %s2804_s3, 4  ;;  %s2734_s8 = int_to_ptr.vmem [resolvable:$false] %s2733_s8 }
 0x5ce   : > { %s2735_s9 = scalar_lea.vmem %s2734_s8, 3072 }
 0x634   : > { %v3406_v4 = vpop.permute.xlu0 %1940 }
 0x635   : > { %v1951_v5 = vsel %vm1599_vm13, 0.0, %v3406_v4 }
 0x636   : > { %2021 = vrot.lane.b32.xlu0 %v1951_v5, %s3668_s7  ;;  %2010 = vrot.lane.b32.xlu1 %v1951_v5, %s2794_s25 }
 0x638   : > { %v2679_v6 = vpop.permute.xlu1 %2678 }
 0x639   : > { %v2681_v56 = vunpack.i.h.bf16 %v2679_v6  ;;  %v2680_v9 = vunpack.i.l.bf16 %v2679_v6 }
 0x63a   : > { %1999 = vrot.lane.b32.xlu0 %v1951_v5, %s3669_s6  ;;  %1988 = vrot.lane.b32.xlu1 %v1951_v5, %s3660_s1 }
 0x63b   : > { %v3415_v40 = vsel %vm1599_vm13, %v2680_v9, %v2681_v56  ;;  %v3421_v11 = vsel %vm1599_vm13, %v3406_v4, %v2680_v9 }
 0x63c   : > { %v1952_v60 = vsel %vm1606_vm14, %v3415_v40, 0.0  ;;  %v2682_v16 = vpack.i.bf16 %v3421_v11, %v1951_v5 }
 0x63d   : > { %v2692_v14 = vpack.i.bf16 %v1952_v60, %v3421_v11 }
 0x63e   : > { %1966 = vrot.lane.b32.xlu1 %v1951_v5, %s3661_s24  ;;  %2036 = vrot.lane.b32.xlu0 %v1952_v60, %s3663_s28 }
 0x642   : > { %2693 = vrot.lane.b32.xlu0 %v2692_v14, %s3668_s7  ;;  %2683 = vrot.lane.b32.xlu1 %v2682_v16, %s3663_s28 }
 0x646   : > { %2703 = vrot.lane.b32.xlu0 %v2692_v14, %s3669_s6  ;;  %2688 = vrot.lane.b32.xlu1 %v2692_v14, %s2794_s25 }
 0x64a   : > { %2713 = vrot.lane.b32.xlu0 %v2692_v14, %s3662_s2  ;;  %2698 = vrot.lane.b32.xlu1 %v2692_v14, %s3660_s1 }
 0x64e   : > { %1977 = vrot.lane.b32.xlu0 %v1951_v5, %s3662_s2  ;;  %2708 = vrot.lane.b32.xlu1 %v2692_v14, %s3661_s24  ;;  %s701_s24 = sand.u32 1, %s2781_s30  }
 0x64f   : > { %s3537_s2 = scalar_lea.sflag [#allocation3], %s701_s24 }
 0x652   : > { %1955 = vrot.lane.b32.xlu0 %v1951_v5, %s2800_s26  ;;  %2718 = vrot.lane.b32.xlu1 %v2692_v14, %s2800_s26  ;;  %s2413_s26 = smul.u32 96, %s701_s24 }
 0x654   : > { %s3508_s6 = scalar_lea.vmem [#allocation2], %s2413_s26 }
 0x655   : > { %s2200_s7 = sshll.u32 %s3508_s6, 4  ;;  %s3526_s7 = int_to_ptr.vmem [resolvable:$true] %s2200_s7 }
 0x656   : > { %1215 = vperm.xlu0 %2470, %v1207_v17   ;;  %1210 = vperm.xlu1 %2471, %v1206_v7   ;;  %s2729_s26 = scalar_lea.vmem %s3526_s7, 1536  ;;  %p2736_p0 = scmp.lt.s32.totalorder %s3526_s7, %s2734_s8 }
 0x657   : > { %p2730_p11 = scmp.ne.s32.totalorder %s3526_s7, %s2729_s26  ;;  %p2737_p1 = scmp.lt.s32.totalorder %s2735_s9, %s2729_s26 }
 0x659   : > { %p2731_p12 = pnand %p2730_p11, %p2965_p5  ;;  %p2738_p2 = por %p2737_p1, %p2736_p0 }
 0x65a   : > { %2155 = vperm.xlu0 %2470, %v2152_v19   ;;  %1810 = vperm.xlu1 %2471, %v1807_v21  }
 0x65b   : > { %p2732_p13 = pneg %p2731_p12 }
 0x65d   : > { %p2739_p3 = pnand %p2738_p2, %p2732_p13 }
 0x65e   : > { %1233 = vperm.xlu0 %2470, %v1225_v22   ;;  %1228 = vperm.xlu1 %2471, %v1224_v23  }
 0x662   : > { %2164 = vperm.xlu0 %2470, %v2161_v24   ;;  %1819 = vperm.xlu1 %2471, %v1816_v18  }
 0x6a8   : > { %v2022_v28 = vpop.permute.xlu0 %2021  ;;  %v2011_v27 = vpop.permute.xlu1 %2010 }
 0x6ac   : > { %v2000_v26 = vpop.permute.xlu0 %1999  ;;  %v1989_v30 = vpop.permute.xlu1 %1988 }
 0x6b0   : > { %v1967_v62 = vpop.permute.xlu1 %1966  ;;  %v2037_v48 = vpop.permute.xlu0 %2036 }
 0x6b1   : > { %v2057_v29 = vpack.c.bf16 %v2037_v48, %v2037_v48 }
 0x6b3   : > { %v2069_v13 = vsel %vm732_vm1, %v2057_v29, 0 }
 0x6b4   : > { %2400 = vmatpush3.bf16.msra.mxu1 %v2069_v13  ;;  %v2694_v15 = vpop.permute.xlu0 %2693  ;;  %v2684_v31 = vpop.permute.xlu1 %2683 }
 0x6b5   : > { %v2686_v32 = vunpack.i.h.bf16 %v2684_v31  ;;  %v2685_v54 = vunpack.i.l.bf16 %v2684_v31  ;;  %2401 = vmatprep.subr.bf16.mxu1 %v2791_v0  ;;  %v2696_v33 = vunpack.i.h.bf16 %v2694_v15  ;;  %v2695_v34 = vunpack.i.l.bf16 %v2694_v15 }
 0x6b7   : > { %v2039_v35 = vsel %vm1069_vm11, %v2686_v32, %v2037_v48  ;;  %v2038_v37 = vsel %vm1069_vm11, %v2685_v54, %v2686_v32  ;;  %v2027_v55 = vsel %vm1046_vm4, %v2022_v28, %v2695_v34  ;;  %v2028_v61 = vsel %vm1046_vm4, %v2695_v34, %v2696_v33 }
 0x6b8   : > { %v2056_v38 = vpack.c.bf16 %v2039_v35, %v2039_v35  ;;  %v2704_v39 = vpop.permute.xlu0 %2703  ;;  %v2689_v42 = vpop.permute.xlu1 %2688  ;;  %v2055_v1 = vpack.c.bf16 %v2038_v37, %v2038_v37  ;;  %vm2175_vm4 = vcmask 556032  }
 0x6b9   : > { %v2691_v41 = vunpack.i.h.bf16 %v2689_v42  ;;  %v2690_v47 = vunpack.i.l.bf16 %v2689_v42  ;;  %v2705_v8 = vunpack.i.l.bf16 %v2704_v39  ;;  %v2706_v43 = vunpack.i.h.bf16 %v2704_v39 }
 0x6ba   : > { %2304 = vmatprep.subr.msk.bf16.mxu0 %vm732_vm1, %v2056_v38  ;;  %v2063_v59 = vsel %vm732_vm1, %v2055_v1, 0  ;;  %vm3673_vm1 = vmmov %vm3672_vm0  ;;  %v2058_v38 = vld [vmem:[%s3597_s20] sm:$0xf] }
 0x6bb   : > { %v2054_v45 = vpack.c.bf16 %v2696_v33, %v2691_v41  ;;  %v2016_v46 = vsel %vm1023_vm5, %v2011_v27, %v2690_v47  ;;  %2078 = vmatpush1.bf16.msra.mxu0 %v2063_v59  ;;  %v2017_v50 = vsel %vm1023_vm5, %v2690_v47, %v2691_v41  ;;  %v2005_v56 = vsel %vm1000_vm6, %v2000_v26, %v2705_v8 }
 0x6bc   : > { %v2052_v51 = vpack.c.bf16 %v2027_v55, %v2016_v46  ;;  %v2714_v52 = vpop.permute.xlu0 %2713  ;;  %v2699_v53 = vpop.permute.xlu1 %2698  ;;  %v2053_v2 = vpack.c.bf16 %v2028_v61, %v2017_v50  ;;  %v2006_v7 = vsel %vm1000_vm6, %v2705_v8, %v2706_v43 }
 0x6bd   : > { %v2701_v5 = vunpack.i.h.bf16 %v2699_v53  ;;  %v2700_v6 = vunpack.i.l.bf16 %v2699_v53  ;;  %2402 = vmatpush3.bf16.msra.mxu1 %v2054_v45  ;;  %v2716_v9 = vunpack.i.h.bf16 %v2714_v52  ;;  %v2715_v60 = vunpack.i.l.bf16 %v2714_v52 }
 0x6be   : > { %2079 = vmatprep.subr.bf16.mxu0 %v2053_v2  ;;  %2403 = vmatprep.subr.bf16.mxu1 %v2791_v0 }
 0x6bf   : > { %v2051_v14 = vpack.c.bf16 %v2706_v43, %v2701_v5  ;;  %v1994_v16 = vsel %vm977_vm7, %v1989_v30, %v2700_v6  ;;  %2080 = vmatpush1.bf16.msra.mxu0 %v2052_v51  ;;  %v1995_v17 = vsel %vm977_vm7, %v2700_v6, %v2701_v5  ;;  %v1984_v28 = vsel %vm954_vm8, %v2715_v60, %v2716_v9 }
 0x6c0   : > { %v2049_v19 = vpack.c.bf16 %v2005_v56, %v1994_v16  ;;  %v1978_v21 = vpop.permute.xlu0 %1977  ;;  %v2709_v22 = vpop.permute.xlu1 %2708  ;;  %v2050_v23 = vpack.c.bf16 %v2006_v7, %v1995_v17 }
 0x6c1   : > { %v2711_v24 = vunpack.i.h.bf16 %v2709_v22  ;;  %v2710_v18 = vunpack.i.l.bf16 %v2709_v22  ;;  %2404 = vmatpush3.bf16.msra.mxu1 %v2051_v14  ;;  %v1983_v27 = vsel %vm954_vm8, %v1978_v21, %v2715_v60 }
 0x6c2   : > { %2081 = vmatprep.subr.bf16.mxu0 %v2050_v23  ;;  %2405 = vmatprep.subr.bf16.mxu1 %v2791_v0 }
 0x6c3   : > { %v2048_v26 = vpack.c.bf16 %v2716_v9, %v2711_v24  ;;  %v1972_v30 = vsel %vm3672_vm0, %v1967_v62, %v2710_v18  ;;  %2082 = vmatpush1.bf16.msra.mxu0 %v2049_v19  ;;  %v1973_v48 = vsel %vm3673_vm1, %v2710_v18, %v2711_v24 }
 0x6c4   : > { %v2046_v29 = vpack.c.bf16 %v1983_v27, %v1972_v30  ;;  %v2719_v13 = vpop.permute.xlu1 %2718  ;;  %v2047_v15 = vpack.c.bf16 %v1984_v28, %v1973_v48  ;;  %v1956_v54 = vpop.permute.xlu0 %1955 }
 0x6c5   : > { %v2721_v31 = vunpack.i.h.bf16 %v2719_v13  ;;  %v2720_v32 = vunpack.i.l.bf16 %v2719_v13  ;;  %2406 = vmatpush3.bf16.msra.mxu1 %v2048_v26 }
 0x6c6   : > { %2083 = vmatprep.subr.bf16.mxu0 %v2047_v15  ;;  %2407 = vmatprep.subr.bf16.mxu1 %v2791_v0 }
 0x6c7   : > { %v2311_v33 = vpack.c.bf16 %v2721_v31, %v3415_v40  ;;  %v1961_v34 = vsel %vm908_vm10, %v1956_v54, %v2720_v32  ;;  %2084 = vmatpush1.bf16.msra.mxu0 %v2046_v29  ;;  %v1962_v62 = vsel %vm908_vm10, %v2720_v32, %v2721_v31 }
 0x6c8   : > { %v2307_v35 = vpack.c.bf16 %v1961_v34, %v3406_v4  ;;  %v2044_v37 = vpack.c.bf16 %v1962_v62, %v3421_v11 }
 0x6c9   : > { %2408 = vmatpush3.bf16.msk.msra.mxu1 %vm3346_vm3, %v2311_v33 }
 0x6ca   : > { %2085 = vmatprep.subr.bf16.mxu0 %v2044_v37 }
 0x6cb   : > { %2308 = vmatpush1.bf16.msk.msra.mxu0 %vm3355_vm9, %v2307_v35 }
 0x6cc   : > { %2410 = vmatmul.mubr.msk.bf16.vlgmr.msra.gmra.mxu1 %vm1464_vm12, %v2058_v38 }
 0x6ce   : > { %2309 = vmatmul.mubr.msk.bf16.vlgmr.msra.gmra.mxu0 %vm1464_vm12, %v2058_v38 }
 0x6d1   : > { %v1216_v0 = vpop.permute.xlu0 %1215  ;;  %v1211_v40 = vpop.permute.xlu1 %1210 }
 0x6d2   : > { %v1221_v25 = vmul.f32 %v1216_v0, %v3169_v44  ;;  %v1222_v39 = vmul.f32 %v1216_v0, %v3171_v49  ;;  %v1223_v42 = vmul.f32 %v1216_v0, %v3163_v57  ;;  %v1218_v36 = vmul.f32 %v1211_v40, %v3165_v58 }
 0x6d3   : > { %v1219_v1 = vmul.f32 %v1211_v40, %v3167_v12  ;;  %v1220_v41 = vmul.f32 %v1211_v40, %v3161_v10 }
 0x6d5   : > { %v2156_v4 = vpop.permute.xlu0 %2155  ;;  %v1811_v11 = vpop.permute.xlu1 %1810 }
 0x6d6   : > { %v1813_v47 = vmul.f32 %v1811_v11, %v3397_v20  ;;  %v1814_v44 = vmul.f32 %v1811_v11, %v3399_v63  ;;  %v1815_v49 = vmul.f32 %v1811_v11, %v3395_v3 }
 0x6d9   : > { %v1234_v55 = vpop.permute.xlu0 %1233  ;;  %v1229_v8 = vpop.permute.xlu1 %1228 }
 0x6da   : > { %v1239_v59 = vadd.f32 %v1234_v55, %v1221_v25  ;;  %v1240_v61 = vadd.f32 %v1234_v55, %v1222_v39  ;;  %v1241_v43 = vadd.f32 %v1234_v55, %v1223_v42  ;;  %v1236_v45 = vadd.f32 %v1229_v8, %v1218_v36 }
 0x6db   : > { %v1237_v57 = vadd.f32 %v1229_v8, %v1219_v1  ;;  %v1238_v46 = vadd.f32 %v1229_v8, %v1220_v41 }
 0x6dc   : > { %v1245_v58 = vmax.f32 %v1239_v59, 0.0  ;;  %v1246_v50 = vmax.f32 %v1240_v61, 0.0  ;;  %v1247_v12 = vmax.f32 %v1241_v43, 0.0  ;;  %v1242_v51 = vmax.f32 %v1236_v45, 0.0 }
 0x6dd   : > { %v1243_v10 = vmax.f32 %v1237_v57, 0.0  ;;  %v1244_v52 = vmax.f32 %v1238_v46, 0.0  ;;  %v1820_v20 = vpop.permute.xlu1 %1819  ;;  %v2165_v9 = vpop.permute.xlu0 %2164 }
 0x6de   : > { %2177 = vst [vmem:[%s3508_s6 + $0x18] sm:$0xff] %v1245_v58  ;;  %2178 = vst [vmem:[%s3508_s6 + $0x20] sm:$0xff] %v1246_v50  ;;  %v1822_v3 = vadd.f32 %v1820_v20, %v1813_v47  ;;  %v1823_v63 = vadd.f32 %v1820_v20, %v1814_v44  ;;  %v1824_v53 = vadd.f32 %v1820_v20, %v1815_v49 }
 0x6df   : > { %2179 = vst.msk [vmem:[%s3508_s6 + $0x28] sm:$0xff] %vm2175_vm4, %v1247_v12  ;;  %2173 = vst [vmem:[%s3508_s6] sm:$0xff] %v1242_v51 }
 0x6e0   : > { %2174 = vst [vmem:[%s3508_s6 + $0x8] sm:$0xff] %v1243_v10  ;;  %2176 = vst.msk [vmem:[%s3508_s6 + $0x10] sm:$0xff] %vm2175_vm4, %v1244_v52  ;;  %v1825_v2 = vmax.f32 %v1822_v3, 0.0  ;;  %v1826_v5 = vmax.f32 %v1823_v63, 0.0  ;;  %v1827_v6 = vmax.f32 %v1824_v53, 0.0 }
 0x6e2   : > { %2180 = vst [vmem:[%s3508_s6 + $0x30] sm:$0xff] %v1825_v2  ;;  %2181 = vst [vmem:[%s3508_s6 + $0x38] sm:$0xff] %v1826_v5 }
 0x6e3   : > { %2182 = vst.msk [vmem:[%s3508_s6 + $0x40] sm:$0xff] %vm2175_vm4, %v1827_v6 }
 0x78c   : > { %v2146_v56 = vpop.f32.mrf.mxu1 }
 0x78d   : > { %v2160_v60 = vmul.f32 %v2156_v4, %v2146_v56 }
 0x78e   : > { %v2105_v14 = vpop.f32.mrf.mxu0  ;;  %v2411_v16 = vpop.f32.mrf.mxu1 }
 0x78f   : > { %v2169_v17 = vadd.f32 %v2165_v9, %v2160_v60  ;;  %v2158_v7 = vmul.f32 %v2156_v4, %v2105_v14 }
 0x790   : > { %v2107_v19 = vpop.f32.mrf.mxu0  ;;  %v2149_v21 = vpop.f32.mrf.mxu1 }
 0x791   : > { %v2172_v22 = vmax.f32 %v2169_v17, 0.0  ;;  %v2167_v23 = vadd.f32 %v2165_v9, %v2158_v7  ;;  %v2159_v24 = vmul.f32 %v2156_v4, %v2107_v19 }
 0x792   : > { %v2109_v18 = vpop.f32.mrf.mxu0  ;;  %v2412_v28 = vpop.f32.mrf.mxu1 }
 0x793   : > { %2185 = vst.msk [vmem:[%s3508_s6 + $0x58] sm:$0xff] %vm2175_vm4, %v2172_v22  ;;  %v2170_v27 = vmax.f32 %v2167_v23, 0.0  ;;  %v2168_v26 = vadd.f32 %v2165_v9, %v2159_v24 }
 0x794   : > { %v2110_v30 = vpop.f32.mrf.mxu0 }
 0x795   : > { %2183 = vst [vmem:[%s3508_s6 + $0x48] sm:$0xff] %v2170_v27  ;;  %v2171_v48 = vmax.f32 %v2168_v26, 0.0 }
 0x797   : > { %2184 = vst [vmem:[%s3508_s6 + $0x50] sm:$0xff] %v2171_v48 }
 0x798   : > { %2742 = shalt.err (!%p2739_p3)
}
 0x799   : > { %s2743_s24 = scalar_lea.hbm %s3532_s5, 1536  ;;  %s2747_s3 = scalar_lea.hbm %s3675_s0, 3072 }
 0x79a   : > { %p2744_p4 = scmp.ne.s32.totalorder %s3532_s5, %s2743_s24  ;;  %p2748_p9 = scmp.lt.s32.totalorder %s3532_s5, %s3675_s0 }
 0x79b   : > { %p2749_p10 = scmp.lt.s32.totalorder %s2747_s3, %s2743_s24 }
 0x79c   : > { %p2745_p7 = pnand %p2744_p4, %p2965_p5 }
 0x79d   : > { %p2750_p11 = por %p2749_p10, %p2748_p9 }
 0x79e   : > { %p2746_p8 = pneg %p2745_p7 }
 0x7a0   : > { %p2751_p12 = pnand %p2750_p11, %p2746_p8 }
 0x7a2   : > { %2754 = shalt.err (!%p2751_p12)
}
 0x7a3   : > { %s2805_s8 = smov 384   ;;  %s2806_s9 = smov 24  }
 0x7a4   : > { %2416 = dma.vmem_to_hbm [thread:$0]  (%p2965_p5), %s3526_s7, 1536, %s3532_s5, %s3537_s2, %s2805_s8, %s2805_s8, %s2806_s9  }
 0x7a5 PF: > { %s3676_s26 = sld [smem:[#allocation7_spill]] }
 0x7a6   : > { %s3677_s6 = sld [smem:[#allocation5_spill]] }
 0x7ab   : > { %p2422_p13 = scmp.ge.s32.totalorder %s3676_s26, 2 }
 0x7ac   : > { %s2215_s10 = sand.u32 1, %s3677_s6  }
 0x7ad   : > { %p2419_p0 = pnand %p2422_p13, %p2969_p6  ;;  %s2216_s24 = scalar_lea.sflag [#allocation3], %s2215_s10 }
 0x7af   : > { %p2420_p1 = pneg %p2419_p0 }
 0x7b1   : > { %2772 = dma.done.wait (%p2420_p1), %s2216_s24, 1536  }
 0x7b2   : > { %2774 = vsyncadd (%p2420_p1), %s2216_s24, 4294965760  ;;  %s3679_s25 = sld [smem:[#allocation8_spill]]  ;;  %s3682_s4 = smov %s2781_s30 }
 0x7b3   : > { %s3680_s3 = sld [smem:[#allocation6_spill]] }
 0x7b4   : > { %s3681_s24 = sld [smem:[#allocation9_spill]] }
 0x7b8   : > { %p33_p2 = scmp.ge.s32.totalorder %s3679_s25, 4  }
 0x7b9   : > { %s3683_s30 = smov %s3680_s3 }
 0x7ba   :  { %35 = sbr.rel (!%p33_p2) target bundleno = 16 (0x10), region = 147 }
 0x7bf   :  { %2221 = vsyncpa [#allocation3], 1 }
 0x7c0   :  { %2223 = vsyncpa [#allocation3 + $0x1], 1 }

</bundles_post_ra>
